<compile_context>
chip_gen: v7x
topology: tpu7x:2x2x1
jax: 0.10.0
libtpu: 0.0.40
codegen_flags: <defaults>
</compile_context>

<pallas_src>
import functools

import jax
import jax.numpy as jnp
from jax.experimental import pallas as pl
from jax.experimental.pallas import tpu as pltpu


# Capability probe: BlockSpec(pipeline_mode=pl.Buffered(1)) for single-buffered
# grid-invariant operands.  Construction-time check only; falls back cleanly.
try:
    pl.BlockSpec((8, 128), lambda i: (0, 0), pipeline_mode=pl.Buffered(1))
    _PIPELINE_MODE_OK = True
except Exception:  # pragma: no cover - older jax
    _PIPELINE_MODE_OK = False


def _round_up(x, m):
    return ((x + m - 1) // m) * m


def _vmem_limit_bytes():
    """Generation-aware VMEM budget: ~3/4 of physical, capped at 96 MiB.

    v5e/v6e (128 MiB) -> 96 MiB; v7x (64 MiB) -> 48 MiB.
    """
    cap = 128 * 1024 * 1024
    try:
        info = pltpu.get_tpu_info()
        for attr in ("vmem_capacity_bytes", "vmem_size_bytes", "vmem_bytes"):
            v = getattr(info, attr, None)
            if v:
                cap = int(v)
                break
    except Exception:
        pass
    return min((cap * 3) // 4, 96 * 1024 * 1024)


def _choose_t_block(T, S_pad, E, dim, ed, cd_bytes, align_bytes, vmem_budget):
    """Largest T tile whose working set fits the VMEM budget."""
    # Single-buffered grid-invariant blocks + weights.
    fixed = cd_bytes * (2 * S_pad * dim          # memory_bank + memory_bank^T
                        + ed * E                  # entity_rep^T
                        + 2 * E * S_pad           # tel + tel^T
                        + dim * (2 * dim + ed)    # fused projection weight
                        + dim * dim)              # W_out (context half)
    fixed += 2 * 8 * _round_up(E, 128) * 4        # entity bias / zero masks (tile-padded)
    # Bytes per query row: double-buffered q / outputs + live intermediates.
    per_row = (2 * dim * cd_bytes                 # q (x2 buffers)
               + 2 * dim * 4                      # attn_h out (x2 buffers, f32)
               + 2 * S_pad * align_bytes          # align out (x2 buffers)
               + S_pad * (8 + cd_bytes)           # al (f32), p (cd), mix/combined (f32)
               + (2 * dim + ed) * 4               # fused projection result
               + 4 * E * 4                        # ea, eav, denom, w
               + 3 * dim * 4)                     # oq, c, attn_h
    per_row = int(per_row * 1.4)                  # headroom for compiler temporaries
    best = 8
    for cand in (512, 256, 128, 64, 32, 16, 8):
        if fixed + cand * per_row <= vmem_budget:
            best = cand
            break
    return T if T <= best else best


def global_attention_kernel(q_ref, mem_ref, memT_ref, entT_ref, tel_ref, telT_ref,
                            ebias_ref, ezero_ref, w_cat_ref, w_outc_ref,
                            attn_out_ref, align_out_ref,
                            *, dim, entity_dim, approx_recip):
    f32 = jnp.float32
    q = q_ref[0]                                   # [tT, dim]   (compute dtype)
    cdt = q.dtype

    # Fused query projections (one MXU push):  x @ [ W_in^T | W_out_q^T | W_in_entity^T ]
    proj = jnp.dot(q, w_cat_ref[...], preferred_element_type=f32)       # [tT, 2*dim+ed]
    qg = proj[:, :dim].astype(cdt)                                      # linear_in(q)
    oq = proj[:, dim:2 * dim]                                           # q @ W_out[:, dim:]^T (f32)
    qe = proj[:, 2 * dim:2 * dim + entity_dim].astype(cdt)              # linear_in_entity(q)

    # Entity attention: masked softmax over entities (additive bias precomputed).
    ea = jnp.dot(qe, entT_ref[0], preferred_element_type=f32) + ebias_ref[0]   # [tT, E]
    ea_exp = jnp.exp(ea - jnp.max(ea, axis=-1, keepdims=True))
    eav = ea_exp * pl.reciprocal(jnp.sum(ea_exp, axis=-1, keepdims=True),
                                 approx=approx_recip)                          # [tT, E]

    # Memory attention scores (general); global row-max (softmax shift invariance).
    al = jnp.dot(qg, memT_ref[0], preferred_element_type=f32)                  # [tT, S]
    # p materialized once in the compute dtype and reused below.
    p = jnp.exp(al - jnp.max(al, axis=-1, keepdims=True)).astype(cdt)          # [tT, S]

    # Per-entity masked softmax + entity mixing, without the [tT, E, S] tensor:
    #   combined[t,s] = p[t,s] * sum_e eav[t,e] / denom[t,e] * tel[e,s]
    denom = jnp.dot(p, telT_ref[0], preferred_element_type=f32)                # [tT, E]
    w = eav * pl.reciprocal(jnp.maximum(denom, f32(1e-30)), approx=approx_recip)
    w = w * ezero_ref[0]                                                       # zero masked entities
    mix = jnp.dot(w.astype(cdt), tel_ref[0], preferred_element_type=f32)       # [tT, S]
    combined = p * mix                                                         # f32 [tT, S]

    # Context vector and output projection (+ tanh for attn_type='general').
    c = jnp.dot(combined.astype(cdt), mem_ref[0], preferred_element_type=f32)  # [tT, dim]
    attn_h = jnp.tanh(jnp.dot(c.astype(cdt), w_outc_ref[...],
                              preferred_element_type=f32) + oq)

    attn_out_ref[0] = attn_h.astype(attn_out_ref.dtype)
    align_out_ref[0] = combined.astype(align_out_ref.dtype)


def global_attention_forward(inp, memory_bank, entity_rep, total_entities_list,
                             count_entities, W_in, W_in_entity, W_out,
                             *, compute_dtype=jnp.float32, align_dtype=jnp.float32,
                             time_major_output=True, t_block=None):
    """Returns (attn_h [T,B,dim], align_vectors [T,B,S]) matching the PyTorch module.

    compute_dtype=jnp.bfloat16 is the recommended MXU fast path on v5e/v6e/v7x
    (f32 accumulation, f32 softmax math).  Set time_major_output=False to get
    [B,T,...] outputs and skip the post-kernel transpose; align_dtype=jnp.bfloat16
    halves the dominant HBM writeback if tolerances allow.
    """
    B, T, dim = inp.shape
    S = memory_bank.shape[1]
    E, ed = entity_rep.shape[1], entity_rep.shape[2]

    cd_bytes = jnp.dtype(compute_dtype).itemsize
    align_bytes = jnp.dtype(align_dtype).itemsize
    approx_recip = jnp.dtype(compute_dtype) != jnp.dtype(jnp.float32)

    # Lane-dense source axis: pad S to a multiple of 128.  Zero-padded memory rows /
    # tel columns contribute exactly 0 to denom/combined, so results are unchanged.
    S_pad = _round_up(S, 128)

    vmem_limit = _vmem_limit_bytes()
    if t_block is None:
        tT = _choose_t_block(T, S_pad, E, dim, ed, cd_bytes, align_bytes,
                             int(vmem_limit * 0.85))
    else:
        tT = min(int(t_block), T)
    T_pad = _round_up(T, tT) if T > tT else T
    n_t = T_pad // tT

    # ---- wrapper-side layout plumbing (padding, pre-transposes, fused weights) ----
    inp_c = inp.astype(compute_dtype)
    if T_pad != T:
        inp_c = jnp.pad(inp_c, ((0, 0), (0, T_pad - T), (0, 0)))

    mem_c = memory_bank.astype(compute_dtype)
    tel_c = total_entities_list.astype(compute_dtype)   # 0/1, exact in bf16
    if S_pad != S:
        mem_c = jnp.pad(mem_c, ((0, 0), (0, S_pad - S), (0, 0)))
        tel_c = jnp.pad(tel_c, ((0, 0), (0, 0), (0, S_pad - S)))
    memT_c = mem_c.transpose(0, 2, 1)                           # [B, dim, S_pad]
    telT_c = tel_c.transpose(0, 2, 1)                           # [B, S_pad, E]
    entT_c = entity_rep.astype(compute_dtype).transpose(0, 2, 1)  # [B, ed, E]

    # sequence_mask(count_entities) -> additive bias + multiplicative zero mask.
    emask = jnp.arange(E)[None, :] < count_entities[:, None]    # [B, E] bool
    ebias = jnp.where(emask, 0.0, -1e30).astype(jnp.float32).reshape(B, 1, E)
    ezero = emask.astype(jnp.float32).reshape(B, 1, E)

    # Fused projection weight; slices ordered so the two dim-wide slices are
    # dim-aligned:  x @ [ W_in^T | W_out[:, dim:]^T | W_in_entity^T ]
    w_cat = jnp.concatenate([W_in.T, W_out[:, dim:].T, W_in_entity.T],
                            axis=1).astype(compute_dtype)       # [dim, 2*dim+ed]
    w_outc = W_out[:, :dim].T.astype(compute_dtype)             # [dim, dim]

    kernel = functools.partial(global_attention_kernel, dim=dim, entity_dim=ed,
                               approx_recip=approx_recip)

    # Advisory cost estimate so XLA schedules the surrounding glue around the call.
    flops = int(2 * B * T_pad * (dim * (2 * dim + ed) + ed * E + dim * S_pad
                                 + 2 * E * S_pad + S_pad * dim + dim * dim))
    transcendentals = int(B * T_pad * (E + S_pad + dim + 2))
    bytes_accessed = int(
        inp_c.size * cd_bytes
        + (2 * mem_c.size + entT_c.size + 2 * tel_c.size) * cd_bytes
        + (ebias.size + ezero.size) * 4
        + (w_cat.size + w_outc.size) * cd_bytes
        + B * T_pad * dim * 4 + B * T_pad * S_pad * align_bytes)

    def invariant(shape, index_map, single_buffer):
        # Grid-invariant / weight blocks: single-buffer to free VMEM (critical on v7x).
        if single_buffer and _PIPELINE_MODE_OK:
            return pl.BlockSpec(shape, index_map, pipeline_mode=pl.Buffered(1))
        return pl.BlockSpec(shape, index_map)

    def run(single_buffer):
        in_specs = [
            pl.BlockSpec((1, tT, dim), lambda b, t: (b, t, 0)),                  # queries
            invariant((1, S_pad, dim), lambda b, t: (b, 0, 0), single_buffer),   # memory_bank
            invariant((1, dim, S_pad), lambda b, t: (b, 0, 0), single_buffer),   # memory_bank^T
            invariant((1, ed, E), lambda b, t: (b, 0, 0), single_buffer),        # entity_rep^T
            invariant((1, E, S_pad), lambda b, t: (b, 0, 0), single_buffer),     # tel
            invariant((1, S_pad, E), lambda b, t: (b, 0, 0), single_buffer),     # tel^T
            invariant((1, 1, E), lambda b, t: (b, 0, 0), single_buffer),         # entity bias
            invariant((1, 1, E), lambda b, t: (b, 0, 0), single_buffer),         # entity zero mask
            invariant((dim, 2 * dim + ed), lambda b, t: (0, 0), single_buffer),  # fused proj W
            invariant((dim, dim), lambda b, t: (0, 0), single_buffer),           # W_out (ctx half)
        ]
        return pl.pallas_call(
            kernel,
            out_shape=(jax.ShapeDtypeStruct((B, T_pad, dim), jnp.float32),
                       jax.ShapeDtypeStruct((B, T_pad, S_pad), align_dtype)),
            grid=(B, n_t),
            in_specs=in_specs,
            out_specs=(
                pl.BlockSpec((1, tT, dim), lambda b, t: (b, t, 0)),
                pl.BlockSpec((1, tT, S_pad), lambda b, t: (b, t, 0)),
            ),
            compiler_params=pltpu.CompilerParams(
                dimension_semantics=("parallel", "parallel"),
                vmem_limit_bytes=vmem_limit),
            cost_estimate=pl.CostEstimate(flops=flops,
                                          transcendentals=transcendentals,
                                          bytes_accessed=bytes_accessed),
        )(inp_c, mem_c, memT_c, entT_c, tel_c, telT_c, ebias, ezero, w_cat, w_outc)

    if _PIPELINE_MODE_OK:
        try:
            attn_h, align = run(True)
        except Exception:
            # Older jax where top-level pipeline_mode is not plumbed: default buffering.
            attn_h, align = run(False)
    else:
        attn_h, align = run(False)

    attn_h = attn_h[:, :T, :]
    align = align[:, :T, :S]
    if time_major_output:
        # PyTorch module returns [tgt_len, batch, ...]; transpose kept in the wrapper
        # so kernel output blocks stay lane-dense.
        return attn_h.transpose(1, 0, 2), align.transpose(1, 0, 2)
    return attn_h, align


# ------------------------------ reference & test ------------------------------

def _softmax_last(x):
    m = jnp.max(x, axis=-1, keepdims=True)
    e = jnp.exp(x - m)
    return e / jnp.sum(e, axis=-1, keepdims=True)


def _reference(inp, mem, ent, tel, count, W_in, W_in_e, W_out):
    """Pure-JAX mirror of the PyTorch forward (attn_type='general', coverage=None)."""
    B, T, dim = inp.shape
    E = ent.shape[1]
    cmask = jnp.arange(E)[None, :] < count[:, None]                 # [B, E]
    qe = inp @ W_in_e.T                                             # [B, T, ed]
    ea = jnp.einsum('bte,bne->btn', qe, ent)                        # [B, T, E]
    ea = jnp.where(cmask[:, None, :], ea, -jnp.inf)
    eav = _softmax_last(ea)
    qg = inp @ W_in.T
    al = jnp.einsum('btd,bsd->bts', qg, mem)                        # [B, T, S]
    a3 = al[:, :, None, :] * tel[:, None, :, :]
    a3 = jnp.where(tel[:, None, :, :] == 0.0, -jnp.inf, a3)
    av = _softmax_last(a3)
    av = jnp.where(cmask[:, None, :, None], av, 0.0)
    comb = jnp.sum(eav[..., None] * av, axis=2)                     # [B, T, S]
    c = jnp.einsum('bts,bsd->btd', comb, mem)
    attn = jnp.tanh(jnp.concatenate([c, inp], axis=-1) @ W_out.T)
    return attn.transpose(1, 0, 2), comb.transpose(1, 0, 2)


if __name__ == "__main__":
    B, T, S, E = 2, 4, 8, 4
    dim, entity_dim = 32, 16

    key = jax.random.PRNGKey(0)
    k = jax.random.split(key, 8)

    inp = jax.random.normal(k[0], (B, T, dim), jnp.float32)
    memory_bank = jax.random.normal(k[1], (B, S, dim), jnp.float32)
    entity_rep = jax.random.normal(k[2], (B, E, entity_dim), jnp.float32)
    # Binary membership matrix; ensure each entity has at least one source position.
    tel = (jax.random.uniform(k[3], (B, E, S)) > 0.4).astype(jnp.float32)
    tel = tel.at[:, :, 0].set(1.0)
    count_entities = jnp.array([3, 2], dtype=jnp.int32)

    # Deterministic synthetic parameters (shapes from __init__ with attn_type='general'):
    W_in = 0.1 * jax.random.normal(k[4], (dim, dim), jnp.float32)                 # linear_in.weight
    W_in_entity = 0.1 * jax.random.normal(k[5], (entity_dim, dim), jnp.float32)   # linear_in_entity.weight
    W_out = 0.1 * jax.random.normal(k[6], (dim, 2 * dim), jnp.float32)            # linear_out.weight (no bias)

    ref_attn, ref_align = _reference(
        inp, memory_bank, entity_rep, tel, count_entities, W_in, W_in_entity, W_out)

    # ---- strict f32 path (exact reciprocals) ----
    attn_h, align = global_attention_forward(
        inp, memory_bank, entity_rep, tel, count_entities, W_in, W_in_entity, W_out,
        compute_dtype=jnp.float32)
    jax.block_until_ready((attn_h, align))
    assert attn_h.shape == (T, B, dim) and align.shape == (T, B, S)
    if not (jnp.allclose(attn_h, ref_attn, atol=1e-4, rtol=1e-4)
            and jnp.allclose(align, ref_align, atol=1e-4, rtol=1e-4)):
        raise AssertionError("Pallas kernel (f32) output does not match reference")

    # ---- bf16 MXU-operand path (recommended on v5e/v6e/v7x), looser tolerance ----
    attn_h16, align16 = global_attention_forward(
        inp, memory_bank, entity_rep, tel, count_entities, W_in, W_in_entity, W_out,
        compute_dtype=jnp.bfloat16)
    jax.block_until_ready((attn_h16, align16))
    if not (jnp.allclose(attn_h16, ref_attn, atol=8e-2, rtol=8e-2)
            and jnp.allclose(align16, ref_align, atol=8e-2, rtol=8e-2)):
        raise AssertionError("Pallas kernel (bf16) output does not match reference")

    print("KERNEL_OK")
</pallas_src>

<mosaic_0001>
module attributes {stable_mosaic.version = 11 : i64} {
  func.func @global_attention_kernel(%arg0: i32, %arg1: i32, %arg2: memref<1x4x32xf32, #tpu.memory_space<vmem>>, %arg3: memref<1x128x32xf32, #tpu.memory_space<vmem>>, %arg4: memref<1x32x128xf32, #tpu.memory_space<vmem>>, %arg5: memref<1x16x4xf32, #tpu.memory_space<vmem>>, %arg6: memref<1x4x128xf32, #tpu.memory_space<vmem>>, %arg7: memref<1x128x4xf32, #tpu.memory_space<vmem>>, %arg8: memref<1x1x4xf32, #tpu.memory_space<vmem>>, %arg9: memref<1x1x4xf32, #tpu.memory_space<vmem>>, %arg10: memref<32x80xf32, #tpu.memory_space<vmem>>, %arg11: memref<32x32xf32, #tpu.memory_space<vmem>>, %arg12: memref<1x4x32xf32, #tpu.memory_space<vmem>>, %arg13: memref<1x4x128xf32, #tpu.memory_space<vmem>>) attributes {dimension_semantics = [#tpu.dimension_semantics<parallel>, #tpu.dimension_semantics<parallel>], iteration_bounds = array<i64: 2, 1>, scalar_prefetch = 0 : i64, scratch_operands = 0 : i64, tpu.core_type = #tpu.core_type<tc>, window_params = [{transform_indices = @transform_0, window_bounds = array<i64: 1, 4, 32>}, {pipeline_mode = #tpu.pipeline_mode<synchronous>, transform_indices = @transform_1, window_bounds = array<i64: 1, 128, 32>}, {pipeline_mode = #tpu.pipeline_mode<synchronous>, transform_indices = @transform_2, window_bounds = array<i64: 1, 32, 128>}, {pipeline_mode = #tpu.pipeline_mode<synchronous>, transform_indices = @transform_3, window_bounds = array<i64: 1, 16, 4>}, {pipeline_mode = #tpu.pipeline_mode<synchronous>, transform_indices = @transform_4, window_bounds = array<i64: 1, 4, 128>}, {pipeline_mode = #tpu.pipeline_mode<synchronous>, transform_indices = @transform_5, window_bounds = array<i64: 1, 128, 4>}, {pipeline_mode = #tpu.pipeline_mode<synchronous>, transform_indices = @transform_6, window_bounds = array<i64: 1, 1, 4>}, {pipeline_mode = #tpu.pipeline_mode<synchronous>, transform_indices = @transform_7, window_bounds = array<i64: 1, 1, 4>}, {pipeline_mode = #tpu.pipeline_mode<synchronous>, transform_indices = @transform_8, window_bounds = array<i64: 32, 80>}, {pipeline_mode = #tpu.pipeline_mode<synchronous>, transform_indices = @transform_9, window_bounds = array<i64: 32, 32>}, {transform_indices = @transform_10, window_bounds = array<i64: 1, 4, 32>}, {transform_indices = @transform_11, window_bounds = array<i64: 1, 4, 128>}]} {
    %c0 = arith.constant 0 : index
    %c0_0 = arith.constant 0 : index
    %c0_1 = arith.constant 0 : index
    %0 = vector.load %arg2[%c0, %c0_0, %c0_1] : memref<1x4x32xf32, #tpu.memory_space<vmem>>, vector<1x4x32xf32>
    %1 = vector.shape_cast %0 : vector<1x4x32xf32> to vector<4x32xf32>
    %c0_2 = arith.constant 0 : index
    %c0_3 = arith.constant 0 : index
    %2 = vector.load %arg10[%c0_2, %c0_3] : memref<32x80xf32, #tpu.memory_space<vmem>>, vector<32x80xf32>
    %cst = arith.constant dense<0.000000e+00> : vector<4x80xf32>
    %3 = tpu.matmul %1, %2, %cst {dimension_numbers = #tpu.dot_dimension_numbers<[1], [0], [0], [1], [0, 0, 1, 1], [], []>} : vector<4x32xf32>, vector<32x80xf32>, vector<4x80xf32> -> vector<4x80xf32>
    %4 = vector.extract_strided_slice %3 {offsets = [0, 0], sizes = [4, 32], strides = [1, 1]} : vector<4x80xf32> to vector<4x32xf32>
    %5 = vector.extract_strided_slice %3 {offsets = [0, 32], sizes = [4, 32], strides = [1, 1]} : vector<4x80xf32> to vector<4x32xf32>
    %6 = vector.extract_strided_slice %3 {offsets = [0, 64], sizes = [4, 16], strides = [1, 1]} : vector<4x80xf32> to vector<4x16xf32>
    %c0_4 = arith.constant 0 : index
    %c0_5 = arith.constant 0 : index
    %c0_6 = arith.constant 0 : index
    %7 = vector.load %arg5[%c0_4, %c0_5, %c0_6] : memref<1x16x4xf32, #tpu.memory_space<vmem>>, vector<1x16x4xf32>
    %8 = vector.shape_cast %7 : vector<1x16x4xf32> to vector<16x4xf32>
    %cst_7 = arith.constant dense<0.000000e+00> : vector<4x4xf32>
    %9 = tpu.matmul %6, %8, %cst_7 {dimension_numbers = #tpu.dot_dimension_numbers<[1], [0], [0], [1], [0, 0, 1, 1], [], []>} : vector<4x16xf32>, vector<16x4xf32>, vector<4x4xf32> -> vector<4x4xf32>
    %c0_8 = arith.constant 0 : index
    %c0_9 = arith.constant 0 : index
    %c0_10 = arith.constant 0 : index
    %10 = vector.load %arg8[%c0_8, %c0_9, %c0_10] : memref<1x1x4xf32, #tpu.memory_space<vmem>>, vector<1x1x4xf32>
    %11 = vector.shape_cast %10 : vector<1x1x4xf32> to vector<1x4xf32>
    %12 = vector.broadcast %11 : vector<1x4xf32> to vector<4x4xf32>
    %13 = arith.addf %9, %12 : vector<4x4xf32>
    %cst_11 = arith.constant dense<0xFF800000> : vector<4xf32>
    %14 = vector.multi_reduction <maximumf>, %13, %cst_11 [1] : vector<4x4xf32> to vector<4xf32>
    %15 = vector.shape_cast %14 : vector<4xf32> to vector<4x1xf32>
    %16 = vector.broadcast %15 : vector<4x1xf32> to vector<4x4xf32>
    %17 = arith.subf %13, %16 : vector<4x4xf32>
    %18 = math.exp %17 : vector<4x4xf32>
    %cst_12 = arith.constant dense<0.000000e+00> : vector<4xf32>
    %19 = vector.multi_reduction <add>, %18, %cst_12 [1] : vector<4x4xf32> to vector<4xf32>
    %20 = vector.shape_cast %19 : vector<4xf32> to vector<4x1xf32>
    %21 = tpu.reciprocal %20 : vector<4x1xf32> -> vector<4x1xf32>
    %22 = vector.broadcast %21 : vector<4x1xf32> to vector<4x4xf32>
    %23 = arith.mulf %18, %22 : vector<4x4xf32>
    %c0_13 = arith.constant 0 : index
    %c0_14 = arith.constant 0 : index
    %c0_15 = arith.constant 0 : index
    %24 = vector.load %arg4[%c0_13, %c0_14, %c0_15] : memref<1x32x128xf32, #tpu.memory_space<vmem>>, vector<1x32x128xf32>
    %25 = vector.shape_cast %24 : vector<1x32x128xf32> to vector<32x128xf32>
    %cst_16 = arith.constant dense<0.000000e+00> : vector<4x128xf32>
    %26 = tpu.matmul %4, %25, %cst_16 {dimension_numbers = #tpu.dot_dimension_numbers<[1], [0], [0], [1], [0, 0, 1, 1], [], []>} : vector<4x32xf32>, vector<32x128xf32>, vector<4x128xf32> -> vector<4x128xf32>
    %cst_17 = arith.constant dense<0xFF800000> : vector<4xf32>
    %27 = vector.multi_reduction <maximumf>, %26, %cst_17 [1] : vector<4x128xf32> to vector<4xf32>
    %28 = vector.shape_cast %27 : vector<4xf32> to vector<4x1xf32>
    %29 = vector.broadcast %28 : vector<4x1xf32> to vector<4x128xf32>
    %30 = arith.subf %26, %29 : vector<4x128xf32>
    %31 = math.exp %30 : vector<4x128xf32>
    %c0_18 = arith.constant 0 : index
    %c0_19 = arith.constant 0 : index
    %c0_20 = arith.constant 0 : index
    %32 = vector.load %arg7[%c0_18, %c0_19, %c0_20] : memref<1x128x4xf32, #tpu.memory_space<vmem>>, vector<1x128x4xf32>
    %33 = vector.shape_cast %32 : vector<1x128x4xf32> to vector<128x4xf32>
    %cst_21 = arith.constant dense<0.000000e+00> : vector<4x4xf32>
    %34 = tpu.matmul %31, %33, %cst_21 {dimension_numbers = #tpu.dot_dimension_numbers<[1], [0], [0], [1], [0, 0, 1, 1], [], []>} : vector<4x128xf32>, vector<128x4xf32>, vector<4x4xf32> -> vector<4x4xf32>
    %cst_22 = arith.constant 1.000000e-30 : f32
    %35 = vector.broadcast %cst_22 : f32 to vector<4x4xf32>
    %36 = arith.maximumf %34, %35 : vector<4x4xf32>
    %37 = tpu.reciprocal %36 : vector<4x4xf32> -> vector<4x4xf32>
    %38 = arith.mulf %23, %37 : vector<4x4xf32>
    %c0_23 = arith.constant 0 : index
    %c0_24 = arith.constant 0 : index
    %c0_25 = arith.constant 0 : index
    %39 = vector.load %arg9[%c0_23, %c0_24, %c0_25] : memref<1x1x4xf32, #tpu.memory_space<vmem>>, vector<1x1x4xf32>
    %40 = vector.shape_cast %39 : vector<1x1x4xf32> to vector<1x4xf32>
    %41 = vector.broadcast %40 : vector<1x4xf32> to vector<4x4xf32>
    %42 = arith.mulf %38, %41 : vector<4x4xf32>
    %c0_26 = arith.constant 0 : index
    %c0_27 = arith.constant 0 : index
    %c0_28 = arith.constant 0 : index
    %43 = vector.load %arg6[%c0_26, %c0_27, %c0_28] : memref<1x4x128xf32, #tpu.memory_space<vmem>>, vector<1x4x128xf32>
    %44 = vector.shape_cast %43 : vector<1x4x128xf32> to vector<4x128xf32>
    %cst_29 = arith.constant dense<0.000000e+00> : vector<4x128xf32>
    %45 = tpu.matmul %42, %44, %cst_29 {dimension_numbers = #tpu.dot_dimension_numbers<[1], [0], [0], [1], [0, 0, 1, 1], [], []>} : vector<4x4xf32>, vector<4x128xf32>, vector<4x128xf32> -> vector<4x128xf32>
    %46 = arith.mulf %31, %45 : vector<4x128xf32>
    %c0_30 = arith.constant 0 : index
    %c0_31 = arith.constant 0 : index
    %c0_32 = arith.constant 0 : index
    %47 = vector.load %arg3[%c0_30, %c0_31, %c0_32] : memref<1x128x32xf32, #tpu.memory_space<vmem>>, vector<1x128x32xf32>
    %48 = vector.shape_cast %47 : vector<1x128x32xf32> to vector<128x32xf32>
    %cst_33 = arith.constant dense<0.000000e+00> : vector<4x32xf32>
    %49 = tpu.matmul %46, %48, %cst_33 {dimension_numbers = #tpu.dot_dimension_numbers<[1], [0], [0], [1], [0, 0, 1, 1], [], []>} : vector<4x128xf32>, vector<128x32xf32>, vector<4x32xf32> -> vector<4x32xf32>
    %c0_34 = arith.constant 0 : index
    %c0_35 = arith.constant 0 : index
    %50 = vector.load %arg11[%c0_34, %c0_35] : memref<32x32xf32, #tpu.memory_space<vmem>>, vector<32x32xf32>
    %cst_36 = arith.constant dense<0.000000e+00> : vector<4x32xf32>
    %51 = tpu.matmul %49, %50, %cst_36 {dimension_numbers = #tpu.dot_dimension_numbers<[1], [0], [0], [1], [0, 0, 1, 1], [], []>} : vector<4x32xf32>, vector<32x32xf32>, vector<4x32xf32> -> vector<4x32xf32>
    %52 = arith.addf %51, %5 : vector<4x32xf32>
    %53 = math.tanh %52 : vector<4x32xf32>
    %c0_37 = arith.constant 0 : index
    %c0_38 = arith.constant 0 : index
    %c0_39 = arith.constant 0 : index
    %54 = vector.load %arg12[%c0_37, %c0_38, %c0_39] : memref<1x4x32xf32, #tpu.memory_space<vmem>>, vector<1x4x32xf32>
    %55 = vector.shape_cast %54 : vector<1x4x32xf32> to vector<4x32xf32>
    %56 = vector.shape_cast %53 : vector<4x32xf32> to vector<1x4x32xf32>
    tpu.vector_store %arg12[%c0_37, %c0_38, %c0_39], %56 {strides = array<i32>} : memref<1x4x32xf32, #tpu.memory_space<vmem>>, vector<1x4x32xf32>,
    %c0_40 = arith.constant 0 : index
    %c0_41 = arith.constant 0 : index
    %c0_42 = arith.constant 0 : index
    %57 = vector.load %arg13[%c0_40, %c0_41, %c0_42] : memref<1x4x128xf32, #tpu.memory_space<vmem>>, vector<1x4x128xf32>
    %58 = vector.shape_cast %57 : vector<1x4x128xf32> to vector<4x128xf32>
    %59 = vector.shape_cast %46 : vector<4x128xf32> to vector<1x4x128xf32>
    tpu.vector_store %arg13[%c0_40, %c0_41, %c0_42], %59 {strides = array<i32>} : memref<1x4x128xf32, #tpu.memory_space<vmem>>, vector<1x4x128xf32>,
    return
  }
  func.func @transform_0(%arg0: i32, %arg1: i32) -> (i32, i32, i32) {
    %c0_i32 = arith.constant 0 : i32
    %c0_i32_0 = arith.constant 0 : i32
    return %arg0, %arg1, %c0_i32 : i32, i32, i32
  }
  func.func @transform_1(%arg0: i32, %arg1: i32) -> (i32, i32, i32) {
    %c0_i32 = arith.constant 0 : i32
    %c0_i32_0 = arith.constant 0 : i32
    %c0_i32_1 = arith.constant 0 : i32
    return %arg0, %c0_i32, %c0_i32_0 : i32, i32, i32
  }
  func.func @transform_2(%arg0: i32, %arg1: i32) -> (i32, i32, i32) {
    %c0_i32 = arith.constant 0 : i32
    %c0_i32_0 = arith.constant 0 : i32
    %c0_i32_1 = arith.constant 0 : i32
    return %arg0, %c0_i32, %c0_i32_0 : i32, i32, i32
  }
  func.func @transform_3(%arg0: i32, %arg1: i32) -> (i32, i32, i32) {
    %c0_i32 = arith.constant 0 : i32
    %c0_i32_0 = arith.constant 0 : i32
    %c0_i32_1 = arith.constant 0 : i32
    return %arg0, %c0_i32, %c0_i32_0 : i32, i32, i32
  }
  func.func @transform_4(%arg0: i32, %arg1: i32) -> (i32, i32, i32) {
    %c0_i32 = arith.constant 0 : i32
    %c0_i32_0 = arith.constant 0 : i32
    %c0_i32_1 = arith.constant 0 : i32
    return %arg0, %c0_i32, %c0_i32_0 : i32, i32, i32
  }
  func.func @transform_5(%arg0: i32, %arg1: i32) -> (i32, i32, i32) {
    %c0_i32 = arith.constant 0 : i32
    %c0_i32_0 = arith.constant 0 : i32
    %c0_i32_1 = arith.constant 0 : i32
    return %arg0, %c0_i32, %c0_i32_0 : i32, i32, i32
  }
  func.func @transform_6(%arg0: i32, %arg1: i32) -> (i32, i32, i32) {
    %c0_i32 = arith.constant 0 : i32
    %c0_i32_0 = arith.constant 0 : i32
    %c0_i32_1 = arith.constant 0 : i32
    return %arg0, %c0_i32, %c0_i32_0 : i32, i32, i32
  }
  func.func @transform_7(%arg0: i32, %arg1: i32) -> (i32, i32, i32) {
    %c0_i32 = arith.constant 0 : i32
    %c0_i32_0 = arith.constant 0 : i32
    %c0_i32_1 = arith.constant 0 : i32
    return %arg0, %c0_i32, %c0_i32_0 : i32, i32, i32
  }
  func.func @transform_8(%arg0: i32, %arg1: i32) -> (i32, i32) {
    %c0_i32 = arith.constant 0 : i32
    %c0_i32_0 = arith.constant 0 : i32
    %c0_i32_1 = arith.constant 0 : i32
    return %c0_i32, %c0_i32_0 : i32, i32
  }
  func.func @transform_9(%arg0: i32, %arg1: i32) -> (i32, i32) {
    %c0_i32 = arith.constant 0 : i32
    %c0_i32_0 = arith.constant 0 : i32
    %c0_i32_1 = arith.constant 0 : i32
    return %c0_i32, %c0_i32_0 : i32, i32
  }
  func.func @transform_10(%arg0: i32, %arg1: i32) -> (i32, i32, i32) {
    %c0_i32 = arith.constant 0 : i32
    %c0_i32_0 = arith.constant 0 : i32
    return %arg0, %arg1, %c0_i32 : i32, i32, i32
  }
  func.func @transform_11(%arg0: i32, %arg1: i32) -> (i32, i32, i32) {
    %c0_i32 = arith.constant 0 : i32
    %c0_i32_0 = arith.constant 0 : i32
    return %arg0, %arg1, %c0_i32 : i32, i32, i32
  }
}

module attributes {stable_mosaic.version = 11 : i64} {
  func.func @global_attention_kernel(%arg0: i32, %arg1: i32, %arg2: memref<1x4x32xf32, #tpu.memory_space<vmem>>, %arg3: memref<1x128x32xf32, #tpu.memory_space<vmem>>, %arg4: memref<1x32x128xf32, #tpu.memory_space<vmem>>, %arg5: memref<1x16x4xf32, #tpu.memory_space<vmem>>, %arg6: memref<1x4x128xf32, #tpu.memory_space<vmem>>, %arg7: memref<1x128x4xf32, #tpu.memory_space<vmem>>, %arg8: memref<1x1x4xf32, #tpu.memory_space<vmem>>, %arg9: memref<1x1x4xf32, #tpu.memory_space<vmem>>, %arg10: memref<32x80xf32, #tpu.memory_space<vmem>>, %arg11: memref<32x32xf32, #tpu.memory_space<vmem>>, %arg12: memref<1x4x32xf32, #tpu.memory_space<vmem>>, %arg13: memref<1x4x128xf32, #tpu.memory_space<vmem>>) attributes {dimension_semantics = [#tpu.dimension_semantics<parallel>, #tpu.dimension_semantics<parallel>], iteration_bounds = array<i64: 2, 1>, scalar_prefetch = 0 : i64, scratch_operands = 0 : i64, tpu.core_type = #tpu.core_type<tc>, window_params = [{transform_indices = @transform_0, window_bounds = array<i64: 1, 4, 32>}, {transform_indices = @transform_1, window_bounds = array<i64: 1, 128, 32>}, {transform_indices = @transform_2, window_bounds = array<i64: 1, 32, 128>}, {transform_indices = @transform_3, window_bounds = array<i64: 1, 16, 4>}, {transform_indices = @transform_4, window_bounds = array<i64: 1, 4, 128>}, {transform_indices = @transform_5, window_bounds = array<i64: 1, 128, 4>}, {transform_indices = @transform_6, window_bounds = array<i64: 1, 1, 4>}, {transform_indices = @transform_7, window_bounds = array<i64: 1, 1, 4>}, {pipeline_mode = #tpu.pipeline_mode<synchronous>, transform_indices = @transform_8, window_bounds = array<i64: 32, 80>}, {pipeline_mode = #tpu.pipeline_mode<synchronous>, transform_indices = @transform_9, window_bounds = array<i64: 32, 32>}, {transform_indices = @transform_10, window_bounds = array<i64: 1, 4, 32>}, {transform_indices = @transform_11, window_bounds = array<i64: 1, 4, 128>}]} {
    %c0 = arith.constant 0 : index
    %c0_0 = arith.constant 0 : index
    %c0_1 = arith.constant 0 : index
    %0 = vector.load %arg2[%c0, %c0_0, %c0_1] : memref<1x4x32xf32, #tpu.memory_space<vmem>>, vector<1x4x32xf32>
    %1 = vector.shape_cast %0 : vector<1x4x32xf32> to vector<4x32xf32>
    %c0_2 = arith.constant 0 : index
    %c0_3 = arith.constant 0 : index
    %2 = vector.load %arg10[%c0_2, %c0_3] : memref<32x80xf32, #tpu.memory_space<vmem>>, vector<32x80xf32>
    %cst = arith.constant dense<0.000000e+00> : vector<4x80xf32>
    %3 = tpu.matmul %1, %2, %cst {dimension_numbers = #tpu.dot_dimension_numbers<[1], [0], [0], [1], [0, 0, 1, 1], [], []>} : vector<4x32xf32>, vector<32x80xf32>, vector<4x80xf32> -> vector<4x80xf32>
    %4 = vector.extract_strided_slice %3 {offsets = [0, 0], sizes = [4, 32], strides = [1, 1]} : vector<4x80xf32> to vector<4x32xf32>
    %5 = vector.extract_strided_slice %3 {offsets = [0, 32], sizes = [4, 32], strides = [1, 1]} : vector<4x80xf32> to vector<4x32xf32>
    %6 = vector.extract_strided_slice %3 {offsets = [0, 64], sizes = [4, 16], strides = [1, 1]} : vector<4x80xf32> to vector<4x16xf32>
    %c0_4 = arith.constant 0 : index
    %c0_5 = arith.constant 0 : index
    %c0_6 = arith.constant 0 : index
    %7 = vector.load %arg5[%c0_4, %c0_5, %c0_6] : memref<1x16x4xf32, #tpu.memory_space<vmem>>, vector<1x16x4xf32>
    %8 = vector.shape_cast %7 : vector<1x16x4xf32> to vector<16x4xf32>
    %cst_7 = arith.constant dense<0.000000e+00> : vector<4x4xf32>
    %9 = tpu.matmul %6, %8, %cst_7 {dimension_numbers = #tpu.dot_dimension_numbers<[1], [0], [0], [1], [0, 0, 1, 1], [], []>} : vector<4x16xf32>, vector<16x4xf32>, vector<4x4xf32> -> vector<4x4xf32>
    %c0_8 = arith.constant 0 : index
    %c0_9 = arith.constant 0 : index
    %c0_10 = arith.constant 0 : index
    %10 = vector.load %arg8[%c0_8, %c0_9, %c0_10] : memref<1x1x4xf32, #tpu.memory_space<vmem>>, vector<1x1x4xf32>
    %11 = vector.shape_cast %10 : vector<1x1x4xf32> to vector<1x4xf32>
    %12 = vector.broadcast %11 : vector<1x4xf32> to vector<4x4xf32>
    %13 = arith.addf %9, %12 : vector<4x4xf32>
    %cst_11 = arith.constant dense<0xFF800000> : vector<4xf32>
    %14 = vector.multi_reduction <maximumf>, %13, %cst_11 [1] : vector<4x4xf32> to vector<4xf32>
    %15 = vector.shape_cast %14 : vector<4xf32> to vector<4x1xf32>
    %16 = vector.broadcast %15 : vector<4x1xf32> to vector<4x4xf32>
    %17 = arith.subf %13, %16 : vector<4x4xf32>
    %18 = math.exp %17 : vector<4x4xf32>
    %cst_12 = arith.constant dense<0.000000e+00> : vector<4xf32>
    %19 = vector.multi_reduction <add>, %18, %cst_12 [1] : vector<4x4xf32> to vector<4xf32>
    %20 = vector.shape_cast %19 : vector<4xf32> to vector<4x1xf32>
    %21 = tpu.reciprocal %20 : vector<4x1xf32> -> vector<4x1xf32>
    %22 = vector.broadcast %21 : vector<4x1xf32> to vector<4x4xf32>
    %23 = arith.mulf %18, %22 : vector<4x4xf32>
    %c0_13 = arith.constant 0 : index
    %c0_14 = arith.constant 0 : index
    %c0_15 = arith.constant 0 : index
    %24 = vector.load %arg4[%c0_13, %c0_14, %c0_15] : memref<1x32x128xf32, #tpu.memory_space<vmem>>, vector<1x32x128xf32>
    %25 = vector.shape_cast %24 : vector<1x32x128xf32> to vector<32x128xf32>
    %cst_16 = arith.constant dense<0.000000e+00> : vector<4x128xf32>
    %26 = tpu.matmul %4, %25, %cst_16 {dimension_numbers = #tpu.dot_dimension_numbers<[1], [0], [0], [1], [0, 0, 1, 1], [], []>} : vector<4x32xf32>, vector<32x128xf32>, vector<4x128xf32> -> vector<4x128xf32>
    %cst_17 = arith.constant dense<0xFF800000> : vector<4xf32>
    %27 = vector.multi_reduction <maximumf>, %26, %cst_17 [1] : vector<4x128xf32> to vector<4xf32>
    %28 = vector.shape_cast %27 : vector<4xf32> to vector<4x1xf32>
    %29 = vector.broadcast %28 : vector<4x1xf32> to vector<4x128xf32>
    %30 = arith.subf %26, %29 : vector<4x128xf32>
    %31 = math.exp %30 : vector<4x128xf32>
    %c0_18 = arith.constant 0 : index
    %c0_19 = arith.constant 0 : index
    %c0_20 = arith.constant 0 : index
    %32 = vector.load %arg7[%c0_18, %c0_19, %c0_20] : memref<1x128x4xf32, #tpu.memory_space<vmem>>, vector<1x128x4xf32>
    %33 = vector.shape_cast %32 : vector<1x128x4xf32> to vector<128x4xf32>
    %cst_21 = arith.constant dense<0.000000e+00> : vector<4x4xf32>
    %34 = tpu.matmul %31, %33, %cst_21 {dimension_numbers = #tpu.dot_dimension_numbers<[1], [0], [0], [1], [0, 0, 1, 1], [], []>} : vector<4x128xf32>, vector<128x4xf32>, vector<4x4xf32> -> vector<4x4xf32>
    %cst_22 = arith.constant 1.000000e-30 : f32
    %35 = vector.broadcast %cst_22 : f32 to vector<4x4xf32>
    %36 = arith.maximumf %34, %35 : vector<4x4xf32>
    %37 = tpu.reciprocal %36 : vector<4x4xf32> -> vector<4x4xf32>
    %38 = arith.mulf %23, %37 : vector<4x4xf32>
    %c0_23 = arith.constant 0 : index
    %c0_24 = arith.constant 0 : index
    %c0_25 = arith.constant 0 : index
    %39 = vector.load %arg9[%c0_23, %c0_24, %c0_25] : memref<1x1x4xf32, #tpu.memory_space<vmem>>, vector<1x1x4xf32>
    %40 = vector.shape_cast %39 : vector<1x1x4xf32> to vector<1x4xf32>
    %41 = vector.broadcast %40 : vector<1x4xf32> to vector<4x4xf32>
    %42 = arith.mulf %38, %41 : vector<4x4xf32>
    %c0_26 = arith.constant 0 : index
    %c0_27 = arith.constant 0 : index
    %c0_28 = arith.constant 0 : index
    %43 = vector.load %arg6[%c0_26, %c0_27, %c0_28] : memref<1x4x128xf32, #tpu.memory_space<vmem>>, vector<1x4x128xf32>
    %44 = vector.shape_cast %43 : vector<1x4x128xf32> to vector<4x128xf32>
    %cst_29 = arith.constant dense<0.000000e+00> : vector<4x128xf32>
    %45 = tpu.matmul %42, %44, %cst_29 {dimension_numbers = #tpu.dot_dimension_numbers<[1], [0], [0], [1], [0, 0, 1, 1], [], []>} : vector<4x4xf32>, vector<4x128xf32>, vector<4x128xf32> -> vector<4x128xf32>
    %46 = arith.mulf %31, %45 : vector<4x128xf32>
    %c0_30 = arith.constant 0 : index
    %c0_31 = arith.constant 0 : index
    %c0_32 = arith.constant 0 : index
    %47 = vector.load %arg3[%c0_30, %c0_31, %c0_32] : memref<1x128x32xf32, #tpu.memory_space<vmem>>, vector<1x128x32xf32>
    %48 = vector.shape_cast %47 : vector<1x128x32xf32> to vector<128x32xf32>
    %cst_33 = arith.constant dense<0.000000e+00> : vector<4x32xf32>
    %49 = tpu.matmul %46, %48, %cst_33 {dimension_numbers = #tpu.dot_dimension_numbers<[1], [0], [0], [1], [0, 0, 1, 1], [], []>} : vector<4x128xf32>, vector<128x32xf32>, vector<4x32xf32> -> vector<4x32xf32>
    %c0_34 = arith.constant 0 : index
    %c0_35 = arith.constant 0 : index
    %50 = vector.load %arg11[%c0_34, %c0_35] : memref<32x32xf32, #tpu.memory_space<vmem>>, vector<32x32xf32>
    %cst_36 = arith.constant dense<0.000000e+00> : vector<4x32xf32>
    %51 = tpu.matmul %49, %50, %cst_36 {dimension_numbers = #tpu.dot_dimension_numbers<[1], [0], [0], [1], [0, 0, 1, 1], [], []>} : vector<4x32xf32>, vector<32x32xf32>, vector<4x32xf32> -> vector<4x32xf32>
    %52 = arith.addf %51, %5 : vector<4x32xf32>
    %53 = math.tanh %52 : vector<4x32xf32>
    %c0_37 = arith.constant 0 : index
    %c0_38 = arith.constant 0 : index
    %c0_39 = arith.constant 0 : index
    %54 = vector.load %arg12[%c0_37, %c0_38, %c0_39] : memref<1x4x32xf32, #tpu.memory_space<vmem>>, vector<1x4x32xf32>
    %55 = vector.shape_cast %54 : vector<1x4x32xf32> to vector<4x32xf32>
    %56 = vector.shape_cast %53 : vector<4x32xf32> to vector<1x4x32xf32>
    tpu.vector_store %arg12[%c0_37, %c0_38, %c0_39], %56 {strides = array<i32>} : memref<1x4x32xf32, #tpu.memory_space<vmem>>, vector<1x4x32xf32>,
    %c0_40 = arith.constant 0 : index
    %c0_41 = arith.constant 0 : index
    %c0_42 = arith.constant 0 : index
    %57 = vector.load %arg13[%c0_40, %c0_41, %c0_42] : memref<1x4x128xf32, #tpu.memory_space<vmem>>, vector<1x4x128xf32>
    %58 = vector.shape_cast %57 : vector<1x4x128xf32> to vector<4x128xf32>
    %59 = vector.shape_cast %46 : vector<4x128xf32> to vector<1x4x128xf32>
    tpu.vector_store %arg13[%c0_40, %c0_41, %c0_42], %59 {strides = array<i32>} : memref<1x4x128xf32, #tpu.memory_space<vmem>>, vector<1x4x128xf32>,
    return
  }
  func.func @transform_0(%arg0: i32, %arg1: i32) -> (i32, i32, i32) {
    %c0_i32 = arith.constant 0 : i32
    %c0_i32_0 = arith.constant 0 : i32
    return %arg0, %arg1, %c0_i32 : i32, i32, i32
  }
  func.func @transform_1(%arg0: i32, %arg1: i32) -> (i32, i32, i32) {
    %c0_i32 = arith.constant 0 : i32
    %c0_i32_0 = arith.constant 0 : i32
    %c0_i32_1 = arith.constant 0 : i32
    return %arg0, %c0_i32, %c0_i32_0 : i32, i32, i32
  }
  func.func @transform_2(%arg0: i32, %arg1: i32) -> (i32, i32, i32) {
    %c0_i32 = arith.constant 0 : i32
    %c0_i32_0 = arith.constant 0 : i32
    %c0_i32_1 = arith.constant 0 : i32
    return %arg0, %c0_i32, %c0_i32_0 : i32, i32, i32
  }
  func.func @transform_3(%arg0: i32, %arg1: i32) -> (i32, i32, i32) {
    %c0_i32 = arith.constant 0 : i32
    %c0_i32_0 = arith.constant 0 : i32
    %c0_i32_1 = arith.constant 0 : i32
    return %arg0, %c0_i32, %c0_i32_0 : i32, i32, i32
  }
  func.func @transform_4(%arg0: i32, %arg1: i32) -> (i32, i32, i32) {
    %c0_i32 = arith.constant 0 : i32
    %c0_i32_0 = arith.constant 0 : i32
    %c0_i32_1 = arith.constant 0 : i32
    return %arg0, %c0_i32, %c0_i32_0 : i32, i32, i32
  }
  func.func @transform_5(%arg0: i32, %arg1: i32) -> (i32, i32, i32) {
    %c0_i32 = arith.constant 0 : i32
    %c0_i32_0 = arith.constant 0 : i32
    %c0_i32_1 = arith.constant 0 : i32
    return %arg0, %c0_i32, %c0_i32_0 : i32, i32, i32
  }
  func.func @transform_6(%arg0: i32, %arg1: i32) -> (i32, i32, i32) {
    %c0_i32 = arith.constant 0 : i32
    %c0_i32_0 = arith.constant 0 : i32
    %c0_i32_1 = arith.constant 0 : i32
    return %arg0, %c0_i32, %c0_i32_0 : i32, i32, i32
  }
  func.func @transform_7(%arg0: i32, %arg1: i32) -> (i32, i32, i32) {
    %c0_i32 = arith.constant 0 : i32
    %c0_i32_0 = arith.constant 0 : i32
    %c0_i32_1 = arith.constant 0 : i32
    return %arg0, %c0_i32, %c0_i32_0 : i32, i32, i32
  }
  func.func @transform_8(%arg0: i32, %arg1: i32) -> (i32, i32) {
    %c0_i32 = arith.constant 0 : i32
    %c0_i32_0 = arith.constant 0 : i32
    %c0_i32_1 = arith.constant 0 : i32
    return %c0_i32, %c0_i32_0 : i32, i32
  }
  func.func @transform_9(%arg0: i32, %arg1: i32) -> (i32, i32) {
    %c0_i32 = arith.constant 0 : i32
    %c0_i32_0 = arith.constant 0 : i32
    %c0_i32_1 = arith.constant 0 : i32
    return %c0_i32, %c0_i32_0 : i32, i32
  }
  func.func @transform_10(%arg0: i32, %arg1: i32) -> (i32, i32, i32) {
    %c0_i32 = arith.constant 0 : i32
    %c0_i32_0 = arith.constant 0 : i32
    return %arg0, %arg1, %c0_i32 : i32, i32, i32
  }
  func.func @transform_11(%arg0: i32, %arg1: i32) -> (i32, i32, i32) {
    %c0_i32 = arith.constant 0 : i32
    %c0_i32_0 = arith.constant 0 : i32
    return %arg0, %arg1, %c0_i32 : i32, i32, i32
  }
}

</mosaic_0001>

<bundles_post_ra>
// kernel: tpu_custom_call.1
= control target key start
LH: loop header
LB: loop body
LE: loop exit
PB: predicated region body
PF: predicated region fallthrough
CT: control target
= control target key end

     0   :  { %s2954_s0 = inlined_call_operand.hbm [shape: f32[2,4,32], index: 0, kind: input, shape index: {}]   ;;  %s2955_s1 = inlined_call_operand.hbm [shape: f32[2,128,32], index: 1, kind: input, shape index: {}]   ;;  %s2956_s2 = inlined_call_operand.hbm [shape: f32[2,32,128], index: 2, kind: input, shape index: {}]   ;;  %s2957_s3 = inlined_call_operand.hbm [shape: f32[2,16,4], index: 3, kind: input, shape index: {}]   ;;  %s2958_s4 = inlined_call_operand.hbm [shape: f32[2,4,128], index: 4, kind: input, shape index: {}]   ;;  %s2959_s5 = inlined_call_operand.hbm [shape: f32[2,128,4], index: 5, kind: input, shape index: {}]   ;;  %s2960_s6 = inlined_call_operand.hbm [shape: f32[2,1,4], index: 6, kind: input, shape index: {}]   ;;  %s2961_s7 = inlined_call_operand.hbm [shape: f32[2,1,4], index: 7, kind: input, shape index: {}]   ;;  %s2962_s8 = inlined_call_operand.hbm [shape: f32[32,80], index: 8, kind: input, shape index: {}]   ;;  %s2963_s9 = inlined_call_operand.hbm [shape: f32[32,32], index: 9, kind: input, shape index: {}]   ;;  %s2964_s10 = inlined_call_operand.hbm [shape: f32[2,4,32], index: 10, kind: output, shape index: {0}]   ;;  %s2965_s11 = inlined_call_operand.hbm [shape: f32[2,4,128], index: 11, kind: output, shape index: {1}]  }
   0x1   :  { %2990 = sst [smem:[#allocation36_spill]] %s2954_s0 }
   0x2   :  { %2991 = sst [smem:[#allocation37_spill]] %s2955_s1 }
   0x3   :  { %2992 = sst [smem:[#allocation38_spill]] %s2956_s2 }
   0x4   :  { %2993 = sst [smem:[#allocation39_spill]] %s2964_s10 }
   0x5   :  { %2994 = sst [smem:[#allocation40_spill]] %s2965_s11 }
   0x6   :  { %17 = vsyncpa [#allocation3], 0 }
   0x7   :  { %19 = vsyncpa [#allocation3 + $0x1], 0 }
   0x8   :  { %20 = vsyncpa [#allocation6], 0 }
   0x9   :  { %21 = vsyncpa [#allocation9], 0 }
   0xa   :  { %22 = vsyncpa [#allocation12], 0 }
   0xb   :  { %23 = vsyncpa [#allocation15], 0 }
   0xc   :  { %24 = vsyncpa [#allocation18], 0 }
   0xd   :  { %25 = vsyncpa [#allocation4], 0 }
   0xe   :  { %27 = vsyncpa [#allocation4 + $0x1], 0 }
   0xf   :  { %28 = vsyncpa [#allocation21], 0 }
  0x10   :  { %30 = vsyncpa [#allocation21 + $0x1], 0  ;;  %s2405_s17 = smov 0   ;;  %s2407_s18 = smov 0  }
  0x11   :  { %s2409_s19 = smov 0   ;;  %s2411_s20 = smov 0  }
  0x12   :  { %s2413_s21 = smov 0   ;;  %s2415_s22 = smov 0  }
  0x13 LB: > { %2995 = sst [smem:[#allocation31_spill]] %s2304_s17  ;;  %s2966_s23 = sadd.s32 4294967295, %s2324_s22   ;;  %s2324_s22 = sphi %s2415_s22, %s36_s22   ;;  %s2320_s21 = sphi %s2413_s21, %s3045_s21   ;;  %s2316_s20 = sphi %s2411_s20, %s3044_s20   ;;  %s2312_s19 = sphi %s2409_s19, %s3043_s19   ;;  %s2308_s18 = sphi %s2407_s18, %s3042_s18   ;;  %s2304_s17 = sphi %s2405_s17, %s3041_s17  }
  0x14   : > { %2996 = sst [smem:[#allocation32_spill]] %s2308_s18  ;;  %s1463_s24 = sadd.s32 4294967294, %s2324_s22  }
  0x15   : > { %2997 = sst [smem:[#allocation33_spill]] %s2324_s22  ;;  %p70_p0 = scmp.ne.s32.totalorder %s2308_s18, %s2304_s17 }
  0x16   : > { %p2441_p1 = scmp.eq.s32.totalorder %s2966_s23, 0  ;;  %p326_p2 = scmp.eq.s32.totalorder %s1463_s24, 1 }
  0x17   : > { %p1464_p3 = scmp.ge.s32.totalorder %s2324_s22, 1  ;;  %p361_p5 = scmp.lt.s32.totalorder %s2324_s22, 3 }
  0x18   : > { %s2998_s25 = scalar_select %p2441_p1, 1, 0 }
  0x19   : > { %p2448_p4 = por %p2441_p1, %p70_p0  ;;  %p2453_p6 = por %p326_p2, %p70_p0 }
  0x1a   : > { %s2967_s28 = sshll.u32 %s2316_s20, 11  ;;  %p2458_p7 = pnand %p1464_p3, %p361_p5 }
  0x1b   : > { %s2999_s26 = scalar_select %p2448_p4, 1, 0 }
  0x1c   : > { %s3001_s27 = scalar_select %p2453_p6, 1, 0 }
  0x1d   : > { %3000 = sst [smem:[#allocation34_spill]] %s2999_s26  ;;  %s3004_s1 = sld [smem:[#allocation37_spill]] }
  0x1e   : > { %3002 = sst [smem:[#allocation35_spill]] %s3001_s27  ;;  %p2974_p8 = pneg %p2458_p7 }
  0x1f   : > { %s3003_s29 = scalar_select %p2458_p7, 1, 0 }
  0x20   : > { %s2326_s14 = smov [#allocation5]   ;;  %p2478_p9 = pnand %p2974_p8, %p2448_p4 }
  0x21   : > { %s376_s15 = sshll.u32 %s2326_s14, 4  ;;  %s1503_s24 = sshll.u32 %s2316_s20, 8  ;;  %s2471_s15 = int_to_ptr.vmem [resolvable:$true] %s376_s15 }
  0x22   : > { %s3005_s16 = scalar_select %p2478_p9, 1, 0 }
  0x23   : > { %s2467_s13 = scalar_lea.hbm %s3004_s1, %s2967_s28  ;;  %s2487_s23 = scalar_lea.hbm %s2957_s3, %s1503_s24 }
  0x24   : > { %s1890_s28 = scalar_lea.hbm %s2467_s13, 2048  ;;  %p2493_p12 = pneg %p2478_p9 }
  0x25   : > { %p1891_p11 = scmp.ne.s32.totalorder %s2467_s13, %s1890_s28  ;;  %s1895_s10 = scalar_lea.hbm %s3004_s1, 4096 }
  0x26   : > { %p1896_p2 = scmp.lt.u32.totalorder %s2467_s13, %s3004_s1  ;;  %p1897_p3 = scmp.lt.u32.totalorder %s1895_s10, %s1890_s28 }
  0x27   : > { %p1893_p13 = pnand %p2493_p12, %p1891_p11  ;;  %p1899_p10 = scmp.lt.u32.totalorder %s1890_s28, %s2467_s13 }
  0x28   : > { %p1898_p5 = por %p1897_p3, %p1896_p2 }
  0x29   : > { %p1894_p0 = pneg %p1893_p13 }
  0x2a   : > { %p1900_p8 = por %p1899_p10, %p1898_p5 }
  0x2c   : > { %p1901_p6 = pnand %p1900_p8, %p1894_p0 }
  0x2e   : > { %1904 = shalt.err (!%p1901_p6)
}
  0x2f   : > { %s1905_s24 = scalar_lea.vmem %s2471_s15, 2048  ;;  %p1913_p7 = scmp.lt.s32.totalorder %s2471_s15, %s2471_s15 }
  0x30   : > { %p1906_p11 = scmp.ne.s32.totalorder %s2471_s15, %s1905_s24  ;;  %p1914_p1 = scmp.lt.s32.totalorder %s1905_s24, %s1905_s24 }
  0x32   : > { %p1908_p13 = pnand %p1906_p11, %p2493_p12  ;;  %p1915_p9 = por %p1914_p1, %p1913_p7 }
  0x34   : > { %p1909_p4 = pneg %p1908_p13 }
  0x36   : > { %p1916_p2 = pnand %p1915_p9, %p1909_p4 }
  0x38   : > { %1919 = shalt.err (!%p1916_p2)
}
  0x39   : > { %s2988_s10 = smov 128   ;;  %s2328_s11 = smov 8  }
  0x3a   : > { %p3007_p6 = scmp.ne.s32.totalorder %s3005_s16, 0  ;;  %s3008_s17 = sshll.u32 %s2316_s20, 11 }
  0x3b   : > { %s2525_s28 = scalar_lea.hbm %s2959_s5, %s3008_s17  ;;  %s2329_s30 = smov [#allocation8]  }
  0x3c   : > { %1774 = dma.hbm_to_vmem [thread:$0]  (!%p3007_p6), %s2467_s13, 2048, %s2471_s15, [#allocation6], %s2988_s10, %s2988_s10, %s2328_s11  }
  0x3d   : > { %s408_s12 = sshll.u32 %s2329_s30, 4  ;;  %s2330_s24 = smov [#allocation11]   ;;  %s409_s12 = int_to_ptr.vmem [resolvable:$true] %s408_s12 }
  0x3e   : > { %s437_s1 = sshll.u32 %s2330_s24, 4  ;;  %s1920_s0 = scalar_lea.hbm %s2487_s23, 256  ;;  %s438_s1 = int_to_ptr.vmem [resolvable:$true] %s437_s1 }
  0x3f   : > { %p1921_p1 = scmp.ne.s32.totalorder %s2487_s23, %s1920_s0  ;;  %s1925_s13 = scalar_lea.hbm %s2957_s3, 512 }
  0x40   : > { %p1926_p8 = scmp.lt.u32.totalorder %s2487_s23, %s2957_s3  ;;  %p1927_p9 = scmp.lt.u32.totalorder %s1925_s13, %s1920_s0 }
  0x41   : > { %p1923_p4 = pnand %p1921_p1, %p2493_p12  ;;  %p1929_p0 = scmp.lt.u32.totalorder %s1920_s0, %s2487_s23 }
  0x42   : > { %p1928_p10 = por %p1927_p9, %p1926_p8 }
  0x43   : > { %p1924_p7 = pneg %p1923_p4 }
  0x44   : > { %p1930_p3 = por %p1929_p0, %p1928_p10 }
  0x46   : > { %p1931_p5 = pnand %p1930_p3, %p1924_p7 }
  0x48   : > { %1934 = shalt.err (!%p1931_p5)
}
  0x49   : > { %s1935_s17 = scalar_lea.vmem %s409_s12, 256  ;;  %p1943_p1 = scmp.lt.s32.totalorder %s409_s12, %s409_s12 }
  0x4a   : > { %p1936_p11 = scmp.ne.s32.totalorder %s409_s12, %s1935_s17  ;;  %p1944_p4 = scmp.lt.s32.totalorder %s1935_s17, %s1935_s17 }
  0x4c   : > { %p1938_p13 = pnand %p1936_p11, %p2493_p12  ;;  %p1945_p6 = por %p1944_p4, %p1943_p1 }
  0x4e   : > { %p1939_p2 = pneg %p1938_p13 }
  0x50   : > { %p1946_p8 = pnand %p1945_p6, %p1939_p2 }
  0x52   : > { %1949 = shalt.err (!%p1946_p8)
}
  0x53   : > { %p3009_p9 = scmp.ne.s32.totalorder %s3005_s16, 0  ;;  %s3010_s18 = smov 128  }
  0x54   : > { %s1474_s0 = sshll.u32 %s2316_s20, 4  ;;  %s1950_s22 = scalar_lea.hbm %s2525_s28, 2048 }
  0x55   : > { %1780 = dma.hbm_to_vmem [thread:$0]  (!%p3009_p9), %s2487_s23, 256, %s409_s12, [#allocation9], %s3010_s18, %s3010_s18, %s2328_s11  }
  0x56   : > { %p1951_p7 = scmp.ne.s32.totalorder %s2525_s28, %s1950_s22  ;;  %s1955_s27 = scalar_lea.hbm %s2959_s5, 4096 }
  0x57   : > { %p1956_p0 = scmp.lt.u32.totalorder %s2525_s28, %s2959_s5  ;;  %p1957_p3 = scmp.lt.u32.totalorder %s1955_s27, %s1950_s22 }
  0x58   : > { %p1953_p6 = pnand %p1951_p7, %p2493_p12  ;;  %p1959_p11 = scmp.lt.u32.totalorder %s1950_s22, %s2525_s28 }
  0x59   : > { %p1958_p5 = por %p1957_p3, %p1956_p0 }
  0x5a   : > { %p1954_p10 = pneg %p1953_p6 }
  0x5b   : > { %p1960_p13 = por %p1959_p11, %p1958_p5 }
  0x5d   : > { %p1961_p2 = pnand %p1960_p13, %p1954_p10 }
  0x5f   : > { %1964 = shalt.err (!%p1961_p2)
}
  0x60   : > { %s1965_s23 = scalar_lea.vmem %s438_s1, 2048  ;;  %p1973_p7 = scmp.lt.s32.totalorder %s438_s1, %s438_s1 }
  0x61   : > { %p1966_p1 = scmp.ne.s32.totalorder %s438_s1, %s1965_s23  ;;  %p1974_p6 = scmp.lt.s32.totalorder %s1965_s23, %s1965_s23 }
  0x63   : > { %p1968_p4 = pnand %p1966_p1, %p2493_p12  ;;  %p1975_p9 = por %p1974_p6, %p1973_p7 }
  0x65   : > { %p1969_p8 = pneg %p1968_p4 }
  0x67   : > { %p1976_p0 = pnand %p1975_p9, %p1969_p8 }
  0x69   : > { %1979 = shalt.err (!%p1976_p0)
}
  0x6a   : > { %p3011_p3 = scmp.ne.s32.totalorder %s3005_s16, 0  ;;  %s464_s15 = scalar_lea.hbm %s2961_s7, %s1474_s0 }
  0x6b   : > { %s2331_s17 = smov [#allocation14]   ;;  %s1502_s10 = sshll.u32 %s2316_s20, 9 }
  0x6c   : > { %1786 = dma.hbm_to_vmem [thread:$0]  (!%p3011_p3), %s2525_s28, 2048, %s438_s1, [#allocation12], %s3010_s18, %s3010_s18, %s2328_s11  }
  0x6d   : > { %s466_s22 = sshll.u32 %s2331_s17, 4  ;;  %s3012_s2 = sld [smem:[#allocation38_spill]]  ;;  %s467_s22 = int_to_ptr.vmem [resolvable:$true] %s466_s22 }
  0x6e   : > { %s1980_s24 = scalar_lea.hbm %s464_s15, 16  ;;  %s1985_s23 = scalar_lea.hbm %s2961_s7, 32 }
  0x6f   : > { %p1981_p9 = scmp.ne.s32.totalorder %s464_s15, %s1980_s24  ;;  %p1986_p11 = scmp.lt.u32.totalorder %s464_s15, %s2961_s7 }
  0x70   : > { %p1987_p13 = scmp.lt.u32.totalorder %s1985_s23, %s1980_s24  ;;  %p1989_p1 = scmp.lt.u32.totalorder %s1980_s24, %s464_s15 }
  0x71   : > { %p1983_p10 = pnand %p1981_p9, %p2493_p12 }
  0x72   : > { %p1988_p2 = por %p1987_p13, %p1986_p11 }
  0x73   : > { %s2577_s30 = scalar_lea.hbm %s3012_s2, %s1502_s10  ;;  %p1984_p5 = pneg %p1983_p10 }
  0x74   : > { %p1990_p4 = por %p1989_p1, %p1988_p2 }
  0x76   : > { %p1991_p8 = pnand %p1990_p4, %p1984_p5 }
  0x78   : > { %1994 = shalt.err (!%p1991_p8)
}
  0x79   : > { %s1995_s17 = scalar_lea.vmem %s467_s22, 16  ;;  %s2002_s10 = scalar_lea.vmem %s467_s22, 32 }
  0x7a   : > { %p1996_p7 = scmp.ne.s32.totalorder %s467_s22, %s1995_s17  ;;  %p2003_p9 = scmp.lt.s32.totalorder %s467_s22, %s467_s22 }
  0x7b   : > { %p2004_p10 = scmp.lt.s32.totalorder %s2002_s10, %s1995_s17 }
  0x7c   : > { %p1998_p6 = pnand %p1996_p7, %p2493_p12 }
  0x7d   : > { %p2005_p3 = por %p2004_p10, %p2003_p9 }
  0x7e   : > { %p1999_p0 = pneg %p1998_p6 }
  0x80   : > { %p2006_p11 = pnand %p2005_p3, %p1999_p0 }
  0x82   : > { %2009 = shalt.err (!%p2006_p11)
}
  0x83   : > { %p3013_p13 = scmp.ne.s32.totalorder %s3005_s16, 0  ;;  %s2592_s26 = sshll.u32 %s2316_s20, 6 }
  0x84   : > { %s2332_s27 = smov [#allocation7]   ;;  %s2598_s23 = scalar_lea.hbm %s2958_s4, %s2592_s26 }
  0x85   : > { %1792 = dma.hbm_to_vmem [thread:$0]  (!%p3013_p13), %s464_s15, 16, %s467_s22, [#allocation15]  }
  0x86   : > { %s392_s24 = sshll.u32 %s2332_s27, 4  ;;  %s2010_s12 = scalar_lea.hbm %s2577_s30, 512  ;;  %s393_s24 = int_to_ptr.vmem [resolvable:$true] %s392_s24 }
  0x87   : > { %p2011_p3 = scmp.ne.s32.totalorder %s2577_s30, %s2010_s12  ;;  %s2015_s15 = scalar_lea.hbm %s3012_s2, 1024 }
  0x88   : > { %p2016_p1 = scmp.lt.u32.totalorder %s2577_s30, %s3012_s2  ;;  %p2017_p4 = scmp.lt.u32.totalorder %s2015_s15, %s2010_s12 }
  0x89   : > { %p2013_p5 = pnand %p2011_p3, %p2493_p12  ;;  %p2019_p7 = scmp.lt.u32.totalorder %s2010_s12, %s2577_s30 }
  0x8a   : > { %p2018_p8 = por %p2017_p4, %p2016_p1 }
  0x8b   : > { %p2014_p2 = pneg %p2013_p5 }
  0x8c   : > { %p2020_p6 = por %p2019_p7, %p2018_p8 }
  0x8e   : > { %p2021_p0 = pnand %p2020_p6, %p2014_p2 }
  0x90   : > { %2024 = shalt.err (!%p2021_p0)
}
  0x91   : > { %s2025_s27 = scalar_lea.vmem %s393_s24, 512  ;;  %p2033_p3 = scmp.lt.s32.totalorder %s393_s24, %s393_s24 }
  0x92   : > { %p2026_p9 = scmp.ne.s32.totalorder %s393_s24, %s2025_s27  ;;  %p2034_p5 = scmp.lt.s32.totalorder %s2025_s27, %s2025_s27 }
  0x94   : > { %p2028_p10 = pnand %p2026_p9, %p2493_p12  ;;  %p2035_p13 = por %p2034_p5, %p2033_p3 }
  0x96   : > { %p2029_p11 = pneg %p2028_p10 }
  0x98   : > { %p2036_p1 = pnand %p2035_p13, %p2029_p11 }
  0x9a   : > { %2039 = shalt.err (!%p2036_p1)
}
  0x9b   : > { %p3014_p4 = scmp.ne.s32.totalorder %s3005_s16, 0  ;;  %s2333_s1 = smov [#allocation10]  }
  0x9c   : > { %s424_s28 = sshll.u32 %s2333_s1, 4  ;;  %s2625_s17 = scalar_lea.hbm %s2960_s6, %s1474_s0  ;;  %s425_s28 = int_to_ptr.vmem [resolvable:$true] %s424_s28 }
  0x9d   : > { %1777 = dma.hbm_to_vmem [thread:$0]  (!%p3014_p4), %s2577_s30, 512, %s393_s24, [#allocation6], %s3010_s18, %s3010_s18, %s2328_s11  }
  0x9e   : > { %s2040_s15 = scalar_lea.hbm %s2598_s23, 64  ;;  %s2045_s27 = scalar_lea.hbm %s2958_s4, 128 }
  0x9f   : > { %p2041_p13 = scmp.ne.s32.totalorder %s2598_s23, %s2040_s15  ;;  %p2046_p7 = scmp.lt.u32.totalorder %s2598_s23, %s2958_s4 }
  0xa0   : > { %p2047_p6 = scmp.lt.u32.totalorder %s2045_s27, %s2040_s15  ;;  %p2049_p9 = scmp.lt.u32.totalorder %s2040_s15, %s2598_s23 }
  0xa1   : > { %p2043_p2 = pnand %p2041_p13, %p2493_p12 }
  0xa2   : > { %p2048_p0 = por %p2047_p6, %p2046_p7 }
  0xa3   : > { %p2044_p8 = pneg %p2043_p2 }
  0xa4   : > { %p2050_p10 = por %p2049_p9, %p2048_p0 }
  0xa6   : > { %p2051_p11 = pnand %p2050_p10, %p2044_p8 }
  0xa8   : > { %2054 = shalt.err (!%p2051_p11)
}
  0xa9   : > { %s2055_s20 = scalar_lea.vmem %s425_s28, 64  ;;  %p2063_p13 = scmp.lt.s32.totalorder %s425_s28, %s425_s28 }
  0xaa   : > { %p2056_p3 = scmp.ne.s32.totalorder %s425_s28, %s2055_s20  ;;  %p2064_p2 = scmp.lt.s32.totalorder %s2055_s20, %s2055_s20 }
  0xac   : > { %p2058_p5 = pnand %p2056_p3, %p2493_p12  ;;  %p2065_p4 = por %p2064_p2, %p2063_p13 }
  0xae   : > { %p2059_p1 = pneg %p2058_p5 }
  0xb0   : > { %p2066_p6 = pnand %p2065_p4, %p2059_p1 }
  0xb2   : > { %2069 = shalt.err (!%p2066_p6)
}
  0xb3   : > { %p3015_p7 = scmp.ne.s32.totalorder %s3005_s16, 0  ;;  %s2334_s2 = smov [#allocation13]  }
  0xb4   : > { %s453_s0 = sshll.u32 %s2334_s2, 4  ;;  %s2335_s24 = smov [#allocation16]   ;;  %s454_s0 = int_to_ptr.vmem [resolvable:$true] %s453_s0 }
  0xb5   : > { %1783 = dma.hbm_to_vmem [thread:$0]  (!%p3015_p7), %s2598_s23, 64, %s425_s28, [#allocation9]  }
  0xb6   : > { %s476_s1 = sshll.u32 %s2335_s24, 4  ;;  %s2070_s12 = scalar_lea.hbm %s2625_s17, 16  ;;  %s477_s1 = int_to_ptr.vmem [resolvable:$true] %s476_s1 }
  0xb7   : > { %p2071_p8 = scmp.ne.s32.totalorder %s2625_s17, %s2070_s12  ;;  %s2075_s22 = scalar_lea.hbm %s2960_s6, 32 }
  0xb8   : > { %p2076_p9 = scmp.lt.u32.totalorder %s2625_s17, %s2960_s6  ;;  %p2077_p10 = scmp.lt.u32.totalorder %s2075_s22, %s2070_s12 }
  0xb9   : > { %p2073_p0 = pnand %p2071_p8, %p2493_p12  ;;  %p2079_p3 = scmp.lt.u32.totalorder %s2070_s12, %s2625_s17 }
  0xba   : > { %p2078_p11 = por %p2077_p10, %p2076_p9 }
  0xbb   : > { %p2074_p4 = pneg %p2073_p0 }
  0xbc   : > { %p2080_p5 = por %p2079_p3, %p2078_p11 }
  0xbe   : > { %p2081_p1 = pnand %p2080_p5, %p2074_p4 }
  0xc0   : > { %2084 = shalt.err (!%p2081_p1)
}
  0xc1   : > { %s2085_s23 = scalar_lea.vmem %s454_s0, 16  ;;  %s2092_s28 = scalar_lea.vmem %s454_s0, 32 }
  0xc2   : > { %p2086_p13 = scmp.ne.s32.totalorder %s454_s0, %s2085_s23  ;;  %p2093_p8 = scmp.lt.s32.totalorder %s454_s0, %s454_s0 }
  0xc3   : > { %p2094_p0 = scmp.lt.s32.totalorder %s2092_s28, %s2085_s23 }
  0xc4   : > { %p2088_p2 = pnand %p2086_p13, %p2493_p12 }
  0xc5   : > { %p2095_p7 = por %p2094_p0, %p2093_p8 }
  0xc6   : > { %p2089_p6 = pneg %p2088_p2 }
  0xc8   : > { %p2096_p9 = pnand %p2095_p7, %p2089_p6 }
  0xca   : > { %2099 = shalt.err (!%p2096_p9)
}
  0xcb   : > { %p3016_p10 = scmp.ne.s32.totalorder %s3005_s16, 0  ;;  %p3017_p4 = scmp.ne.s32.totalorder %s2998_s25, 0 }
  0xcc   : > { %p3018_p11 = scmp.ne.s32.totalorder %s3003_s29, 0  ;;  %s2336_s30 = smov [#allocation17]  }
  0xcd   : > { %1789 = dma.hbm_to_vmem [thread:$0]  (!%p3016_p10), %s2625_s17, 16, %s454_s0, [#allocation12]  }
  0xce   : > { %p3019_p3 = pneg %p3018_p11  ;;  %s489_s20 = sshll.u32 %s2336_s30, 4  ;;  %s490_s20 = int_to_ptr.vmem [resolvable:$true] %s489_s20 }
  0xcf   : > { %s2100_s16 = scalar_lea.hbm %s2962_s8, 512 }
  0xd0   : > { %p2666_p5 = pnand %p3019_p3, %p3017_p4  ;;  %p2101_p12 = scmp.ne.s32.totalorder %s2962_s8, %s2100_s16 }
  0xd1   : > { %p2107_p2 = scmp.lt.u32.totalorder %s2100_s16, %s2962_s8 }
  0xd2   : > { %p2102_p7 = pneg %p2666_p5 }
  0xd4   : > { %p2103_p1 = pnand %p2102_p7, %p2101_p12 }
  0xd6   : > { %p2104_p13 = pneg %p2103_p1 }
  0xd8   : > { %p2109_p6 = pnand %p2107_p2, %p2104_p13 }
  0xda   : > { %2112 = shalt.err (!%p2109_p6)
}
  0xdb   : > { %s2113_s15 = scalar_lea.vmem %s477_s1, 512  ;;  %p2121_p10 = scmp.lt.s32.totalorder %s477_s1, %s477_s1 }
  0xdc   : > { %p2114_p8 = scmp.ne.s32.totalorder %s477_s1, %s2113_s15  ;;  %p2122_p4 = scmp.lt.s32.totalorder %s2113_s15, %s2113_s15 }
  0xde   : > { %p2116_p0 = pnand %p2114_p8, %p2102_p7  ;;  %p2123_p3 = por %p2122_p4, %p2121_p10 }
  0xe0   : > { %p2117_p9 = pneg %p2116_p0 }
  0xe2   : > { %p2124_p11 = pnand %p2123_p3, %p2117_p9 }
  0xe4   : > { %2127 = shalt.err (!%p2124_p11)
}
  0xe5   : > { %1795 = dma.hbm_to_vmem [thread:$0]  (!%p2666_p5), %s2962_s8, 512, %s477_s1, [#allocation15], %s3010_s18, %s3010_s18, %s2328_s11  }
  0xe6   : > { %s2128_s28 = scalar_lea.hbm %s2963_s9, 512 }
  0xe7   : > { %p2129_p12 = scmp.ne.s32.totalorder %s2963_s9, %s2128_s28  ;;  %p2135_p13 = scmp.lt.u32.totalorder %s2128_s28, %s2963_s9 }
  0xe9   : > { %p2131_p11 = pnand %p2129_p12, %p2102_p7 }
  0xeb   : > { %p2132_p1 = pneg %p2131_p11 }
  0xed   : > { %p2137_p2 = pnand %p2135_p13, %p2132_p1 }
  0xef   : > { %2140 = shalt.err (!%p2137_p2)
}
  0xf0   : > { %s2141_s1 = scalar_lea.vmem %s490_s20, 512  ;;  %p2149_p9 = scmp.lt.s32.totalorder %s490_s20, %s490_s20 }
  0xf1   : > { %p2142_p6 = scmp.ne.s32.totalorder %s490_s20, %s2141_s1  ;;  %p2150_p10 = scmp.lt.s32.totalorder %s2141_s1, %s2141_s1 }
  0xf3   : > { %p2144_p8 = pnand %p2142_p6, %p2102_p7  ;;  %p2151_p4 = por %p2150_p10, %p2149_p9 }
  0xf5   : > { %p2145_p0 = pneg %p2144_p8 }
  0xf7   : > { %p2152_p3 = pnand %p2151_p4, %p2145_p0 }
  0xf9   : > { %2155 = shalt.err (!%p2152_p3)
}
  0xfa   : > { %s3021_s17 = sld [smem:[#allocation32_spill]]  ;;  %s3022_s0 = sld [smem:[#allocation33_spill]] }
  0xfb   : > { %1798 = dma.hbm_to_vmem [thread:$0]  (!%p2666_p5), %s2963_s9, 512, %s490_s20, [#allocation18], %s3010_s18, %s3010_s18, %s2328_s11  }
  0xfc   : > { %s48_s15 = sadd.s32 1, %s2320_s21  ;;  %s57_s14 = sadd.s32 1, %s2312_s19 }
  0xfd   : > { %p50_p7 = scmp.ge.s32.totalorder %s48_s15, 2  ;;  %s503_s18 = sand.u32 1, %s2312_s19  }
  0xfe   : > { %s1479_s20 = sshll.u32 %s503_s18, 2  ;;  %s1480_s28 = sshll.u32 %s2320_s21, 6 }
  0xff   : > { %s3047_s15 = smov (%p50_p7, %s48_s15), 0  ;;  %s3026_s24 = sld [smem:[#allocation36_spill]] }
 0x100   : > { %p64_p12 = scmp.ne.s32.totalorder %s2312_s19, %s3021_s17  ;;  %p65_p11 = scmp.eq.s32.totalorder %s3022_s0, 0 }
 0x101   : > { %s3023_s22 = sadd.s32 4294967295, %s3022_s0   ;;  %s52_s11 = ssub.s32 %s2320_s21, %s3047_s15 }
 0x102   : > { %p320_p1 = scmp.eq.s32.totalorder %s3023_s22, 1  ;;  %p2727_p13 = por %p65_p11, %p64_p12 }
 0x103   : > { %p1812_p5 = scmp.lt.s32.totalorder %s3022_s0, 2  ;;  %p55_p6 = scmp.eq.s32.totalorder %s52_s11, 0 }
 0x104   : > { %p2731_p2 = por %p320_p1, %p64_p12  ;;  %s507_s1 = scalar_lea.vmem [#allocation2], %s1479_s20 }
 0x105   : > { %s2740_s23 = scalar_select %p55_p6, %s2312_s19, %s57_s14  }
 0x106   : > { %s2746_s16 = scalar_lea.hbm %s3026_s24, %s1480_s28  ;;  %s515_s12 = sshll.u32 %s507_s1, 4  ;;  %s2748_s12 = int_to_ptr.vmem [resolvable:$true] %s515_s12 }
 0x107   : > { %p2752_p8 = pnand %p1812_p5, %p2727_p13  ;;  %s504_s17 = scalar_lea.sflag [#allocation3], %s503_s18 }
 0x108   : > { %s2156_s0 = scalar_lea.hbm %s2746_s16, 64  ;;  %s2161_s11 = scalar_lea.hbm %s3026_s24, 128 }
 0x109   : > { %p2157_p0 = scmp.ne.s32.totalorder %s2746_s16, %s2156_s0  ;;  %p2158_p9 = pneg %p2752_p8 }
 0x10a   : > { %p2162_p3 = scmp.lt.u32.totalorder %s2746_s16, %s3026_s24  ;;  %p2163_p7 = scmp.lt.u32.totalorder %s2161_s11, %s2156_s0 }
 0x10b   : > { %p2159_p10 = pnand %p2158_p9, %p2157_p0  ;;  %p2165_p11 = scmp.lt.u32.totalorder %s2156_s0, %s2746_s16 }
 0x10c   : > { %p2164_p12 = por %p2163_p7, %p2162_p3 }
 0x10d   : > { %p2160_p4 = pneg %p2159_p10 }
 0x10e   : > { %p2166_p1 = por %p2165_p11, %p2164_p12 }
 0x110   : > { %p2167_p13 = pnand %p2166_p1, %p2160_p4 }
 0x112   : > { %2170 = shalt.err (!%p2167_p13)
}
 0x113   : > { %s2171_s18 = scalar_lea.vmem %s2748_s12, 64  ;;  %s2337_s28 = smov [#allocation2]  }
 0x114   : > { %p2172_p5 = scmp.ne.s32.totalorder %s2748_s12, %s2171_s18  ;;  %s2176_s30 = sshll.u32 %s2337_s28, 4  ;;  %s2177_s30 = int_to_ptr.vmem [resolvable:$false] %s2176_s30 }
 0x115   : > { %s2178_s2 = scalar_lea.vmem %s2177_s30, 128  ;;  %p2179_p10 = scmp.lt.s32.totalorder %s2748_s12, %s2177_s30 }
 0x116   : > { %p2174_p6 = pnand %p2172_p5, %p2158_p9  ;;  %p2180_p3 = scmp.lt.s32.totalorder %s2178_s2, %s2171_s18 }
 0x118   : > { %p2175_p0 = pneg %p2174_p6  ;;  %p2181_p7 = por %p2180_p3, %p2179_p10 }
 0x11a   : > { %p2182_p12 = pnand %p2181_p7, %p2175_p0 }
 0x11c   : > { %2185 = shalt.err (!%p2182_p12)
}
 0x11d   : > { %1802 = dma.hbm_to_vmem [thread:$0]  (!%p2752_p8), %s2746_s16, 64, %s2748_s12, %s504_s17  }
 0x11e   : > { %p3028_p4 = scmp.ne.s32.totalorder %s3003_s29, 0 }
 0x11f   : > { %s3029_s1 = sld [smem:[#allocation32_spill]] (!%p3028_p4)  ;;  %s3030_s0 = sld [smem:[#allocation34_spill]] (!%p3028_p4) }
 0x120   : > { %524 = sbr.rel (%p3028_p4) target bundleno = 1920 (0x780), region = 60 }
 0x125   : > { %s2784_s14 = sand.u32 (!%p3028_p4), 1, %s3029_s1   ;;  %p3031_p9 = scmp.ne.s32.totalorder (!%p3028_p4), %s3030_s0, 0 }
 0x126   : > { %s2787_s22 = sshll.u32 (!%p3028_p4), %s2784_s14, 2  ;;  %s527_s11 = scalar_lea.sflag (!%p3028_p4), [#allocation3], %s2784_s14 }
 0x127   : > { %s530_s10 = scalar_lea.vmem [#allocation2], %s2787_s22 }
 0x128   : > { %2267 = dma.done.wait (%p3031_p9), %s527_s11, 64  }
 0x129   : > { %2269 = vsyncadd (%p3031_p9), %s527_s11, 4294967232 }
 0x12a   : > { %2271 = dma.done.wait (%p3031_p9), [#allocation6], 2560  }
 0x12b   : > { %2273 = vsyncadd (%p3031_p9), [#allocation6], 4294964736 }
 0x12c   : > { %2275 = dma.done.wait (%p3031_p9), [#allocation9], 320  }
 0x12d   : > { %2277 = vsyncadd (%p3031_p9), [#allocation9], 4294966976 }
 0x12e   : > { %2279 = dma.done.wait (%p3031_p9), [#allocation12], 2064  }
 0x12f   : > { %2281 = vsyncadd (%p3031_p9), [#allocation12], 4294965232 }
 0x130   : > { %2283 = dma.done.wait (%p3031_p9), [#allocation15], 16  }
 0x131   : > { %2285 = vsyncadd (%p3031_p9), [#allocation15], 4294967280  ;;  %p3032_p8 = scmp.ne.s32.totalorder %s2998_s25, 0 }
 0x133   : > { %2287 = dma.done.wait (%p3032_p8), [#allocation15], 512  }
 0x134   : > { %2289 = vsyncadd (%p3032_p8), [#allocation15], 4294966784 }
 0x135   : > { %2291 = dma.done.wait (%p3032_p8), [#allocation18], 512  }
 0x136   : > { %2293 = vsyncadd (%p3032_p8), [#allocation18], 4294966784  ;;  %v2338_v0 = vmov 0.0|0.0   ;;  %vm2339_vm0 = vmmov 0   ;;  %v2340_v1 = vmov 0.0   ;;  %v611_v2 = vld [vmem:[#allocation16] sm:$0xff] }
 0x137   : > { %1674 = vmatprep.subr.bf16.mxu0 %v2338_v0  ;;  %1567 = vmatprep.mubr.msk.f32.mxu0 %vm2339_vm0, %v2340_v1  ;;  %v612_v3 = vld [vmem:[#allocation16 + $0x8] sm:$0xff]  ;;  %v613_v4 = vld [vmem:[#allocation16 + $0x10] sm:$0xff]  ;;  %v614_v6 = vld [vmem:[#allocation16 + $0x18] sm:$0xff]  ;;  %vm615_vm1 = vcmask 261120   ;;  %s2341_s25 = smov 64   ;;  %vm701_vm2 = vcmask 130048  }
 0x138   : > { %1680 = vmatprep.subr.bf16.mxu1 %v2338_v0  ;;  %1574 = vmatprep.mubr.msk.f32.mxu1 %vm2339_vm0, %v2340_v1  ;;  %v1675_v5 = vpack.c.bf16 %v612_v3, %v611_v2  ;;  %v1678_v7 = vpack.c.bf16 %v614_v6, %v613_v4  ;;  %v610_v8 = vld [vmem:[%s530_s10] sm:$0xf]  ;;  %v689_v9 = vld [vmem:[#allocation8] sm:$0xff]  ;;  %v690_v10 = vld [vmem:[#allocation8 + $0x8] sm:$0xff]  ;;  %vm774_vm3 = vcmask 27648   ;;  %vm862_vm4 = vcmask 1043456  }
 0x139   : > { %v1681_v11 = vpack.c.bf16 %v690_v10, %v689_v9  ;;  %v786_v14 = vld [vmem:[#allocation7] sm:$0xff]  ;;  %v787_v15 = vld [vmem:[#allocation7 + $0x8] sm:$0xff]  ;;  %v788_v17 = vld [vmem:[#allocation7 + $0x10] sm:$0xff]  ;;  %s2342_s29 = smov 96   ;;  %vm967_vm5 = vcmask 31744   ;;  %s609_s16 = scalar_lea.vmem [#allocation20], %s2787_s22 }
 0x13a   : > { %1676 = vmatpush3.bf16.msra.mxu0 %v1675_v5  ;;  %v1684_v16 = vpack.c.bf16 %v787_v15, %v786_v14  ;;  %v789_v18 = vld [vmem:[#allocation7 + $0x18] sm:$0xff]  ;;  %v871_v23 = vld [vmem:[#allocation11 + $0x10] sm:$0xff]  ;;  %v872_v25 = vld [vmem:[#allocation11 + $0x18] sm:$0xff]  ;;  %s1249_s12 = sshll.u32 %s609_s16, 4  ;;  %s3033_s20 = sld [smem:[#allocation40_spill]]  ;;  %s1250_s12 = int_to_ptr.vmem [resolvable:$true] %s1249_s12 }
 0x13b   : > { %1677 = vmatprep.subr.bf16.mxu0 %v2338_v0  ;;  %1682 = vmatpush3.bf16.msra.mxu1 %v1681_v11  ;;  %v1687_v20 = vpack.c.bf16 %v789_v18, %v788_v17  ;;  %v869_v21 = vld [vmem:[#allocation11] sm:$0xff]  ;;  %v870_v22 = vld [vmem:[#allocation11 + $0x8] sm:$0xff]  ;;  %v1693_v26 = vpack.c.bf16 %v872_v25, %v871_v23  ;;  %v875_v38 = vld [vmem:[#allocation11 + $0x30] sm:$0xff]  ;;  %s1221_s30 = scalar_lea.sflag [#allocation21], %s2784_s14  ;;  %s2186_s2 = scalar_lea.vmem %s1250_s12, 64 }
 0x13c   : > { %1683 = vmatprep.subr.bf16.mxu1 %v2338_v0  ;;  %v1690_v24 = vpack.c.bf16 %v870_v22, %v869_v21  ;;  %v873_v27 = vld [vmem:[#allocation11 + $0x20] sm:$0xff]  ;;  %v874_v28 = vld [vmem:[#allocation11 + $0x28] sm:$0xff]  ;;  %v876_v39 = vld [vmem:[#allocation11 + $0x38] sm:$0xff]  ;;  %p2187_p11 = scmp.ne.s32.totalorder %s1250_s12, %s2186_s2  ;;  %s2343_s1 = smov [#allocation20]  }
 0x13d   : > { %v1696_v29 = vpack.c.bf16 %v874_v28, %v873_v27  ;;  %v1488_v30 = vld [vmem:[#allocation13] ss:$0 sm:$0xff]  ;;  %v1699_v40 = vpack.c.bf16 %v876_v39, %v875_v38  ;;  %v878_v42 = vld [vmem:[#allocation11 + $0x48] sm:$0xff]  ;;  %v879_v44 = vld [vmem:[#allocation11 + $0x50] sm:$0xff]  ;;  %s2190_s0 = sshll.u32 %s2343_s1, 4  ;;  %s2191_s0 = int_to_ptr.vmem [resolvable:$false] %s2190_s0 }
 0x13e   : > { %1679 = vmatpush3.bf16.msra.mxu0 %v1678_v7  ;;  %v877_v41 = vld [vmem:[#allocation11 + $0x40] sm:$0xff]  ;;  %v880_v45 = vld [vmem:[#allocation11 + $0x58] sm:$0xff]  ;;  %v882_v48 = vld [vmem:[#allocation11 + $0x68] sm:$0xff]  ;;  %p2188_p1 = pnand %p2187_p11, %p2731_p2  ;;  %s2192_s11 = scalar_lea.vmem %s2191_s0, 128 }
 0x13f   : > { %1689 = vmatprep.subr.bf16.mxu0 %v2338_v0  ;;  %v1702_v43 = vpack.c.bf16 %v878_v42, %v877_v41  ;;  %v1705_v46 = vpack.c.bf16 %v880_v45, %v879_v44  ;;  %v881_v47 = vld [vmem:[#allocation11 + $0x60] sm:$0xff]  ;;  %v883_v50 = vld [vmem:[#allocation11 + $0x70] sm:$0xff]  ;;  %v884_v51 = vld [vmem:[#allocation11 + $0x78] sm:$0xff]  ;;  %p2193_p5 = scmp.lt.s32.totalorder %s1250_s12, %s2191_s0  ;;  %p2194_p6 = scmp.lt.s32.totalorder %s2192_s11, %s2186_s2 }
 0x140   : > { %v1708_v49 = vpack.c.bf16 %v882_v48, %v881_v47  ;;  %v1711_v52 = vpack.c.bf16 %v884_v51, %v883_v50  ;;  %v966_v62 = vld [vmem:[#allocation10] sm:$0xf]  ;;  %v1045_v7 = vld [vmem:[#allocation5] sm:$0xff]  ;;  %v1491_v10 = vld [vmem:[#allocation14] ss:$0 sm:$0xff]  ;;  %s3034_s28 = smov %s3033_s20  ;;  %s2880_s18 = scalar_lea.hbm %s3033_s20, %s2592_s26 }
 0x141   : > { %1568 = vmatmul.mubr.msk.f32.vlgmr.msra.gmra.mrb[0].mxu0 %vm615_vm1, %v610_v8  ;;  %v1046_v8 = vld [vmem:[#allocation5 + $0x8] sm:$0xff]  ;;  %v1047_v14 = vld [vmem:[#allocation5 + $0x10] sm:$0xff]  ;;  %v1048_v15 = vld [vmem:[#allocation5 + $0x18] sm:$0xff]  ;;  %p2189_p13 = pneg %p2188_p1  ;;  %p2195_p0 = por %p2194_p6, %p2193_p5 }
 0x142   : > { %1620 = vmatprep.mubr.msk.f32.mxu0 %vm2339_vm0, %v2340_v1  ;;  %1691 = vmatpush3.bf16.msra.mxu0 %v1690_v24  ;;  %v1049_v17 = vld [vmem:[#allocation5 + $0x20] sm:$0xff]  ;;  %v1050_v18 = vld [vmem:[#allocation5 + $0x28] sm:$0xff]  ;;  %v1052_v21 = vld [vmem:[#allocation5 + $0x38] sm:$0xff] }
 0x143   : > { %1692 = vmatprep.subr.bf16.mxu0 %v2338_v0  ;;  %v1053_v23 = vld [vmem:[#allocation5 + $0x40] sm:$0xff]  ;;  %v1054_v24 = vld [vmem:[#allocation5 + $0x48] sm:$0xff]  ;;  %v1134_v38 = vld [vmem:[#allocation17 + $0x18] sm:$0xff]  ;;  %p2196_p10 = pnand %p2195_p0, %p2189_p13 }
 0x144   : > { %v1726_v25 = vpack.c.bf16 %v1054_v24, %v1053_v23  ;;  %v1057_v28 = vld [vmem:[#allocation5 + $0x60] sm:$0xff] }
 0x146   : > { %1694 = vmatpush3.bf16.msra.mxu0 %v1693_v26  ;;  %v1056_v26 = vld [vmem:[#allocation5 + $0x58] sm:$0xff] }
 0x147   : > { %1695 = vmatprep.subr.bf16.mxu0 %v2338_v0 }
 0x14a   : > { %1697 = vmatpush3.bf16.msra.mxu0 %v1696_v29  ;;  %v1058_v29 = vld [vmem:[#allocation5 + $0x68] sm:$0xff] }
 0x14b   : > { %1698 = vmatprep.subr.bf16.mxu0 %v2338_v0 }
 0x14e   : > { %1700 = vmatpush3.bf16.msra.mxu0 %v1699_v40 }
 0x14f   : > { %1701 = vmatprep.subr.bf16.mxu0 %v2338_v0 }
 0x152   : > { %1703 = vmatpush3.bf16.msra.mxu0 %v1702_v43 }
 0x153   : > { %1704 = vmatprep.subr.bf16.mxu0 %v2338_v0 }
 0x156   : > { %1706 = vmatpush3.bf16.msra.mxu0 %v1705_v46 }
 0x157   : > { %1707 = vmatprep.subr.bf16.mxu0 %v2338_v0 }
 0x15a   : > { %1709 = vmatpush3.bf16.msra.mxu0 %v1708_v49 }
 0x15b   : > { %1710 = vmatprep.subr.bf16.mxu0 %v2338_v0 }
 0x15e   : > { %1712 = vmatpush3.bf16.msra.mxu0 %v1711_v52 }
 0x15f   : > { %1737 = vmatprep.subr.bf16.mxu0 %v2338_v0 }
 0x214   : > { %v2833_v12 = vpop.f32.mrb[0].mxu0 }
 0x215   : > { %699 = vrot.lane.b32.xlu0 %v2833_v12, %s2341_s25  ;;  %v1569_v13 = vpop.f32.mrb[1].mxu0 }
 0x287   : > { %v700_v19 = vpop.permute.xlu0 %699 }
 0x288   : > { %1575 = vmatmul.mubr.msk.f32.vlgmr.msra.gmra.mrb[0].mxu1 %vm701_vm2, %v700_v19  ;;  %v1720_v19 = vpack.c.bf16 %v1050_v18, %v1049_v17 }
 0x289   : > { %1685 = vmatpush3.bf16.msra.mxu1 %v1684_v16  ;;  %1585 = vmatprep.mubr.msk.f32.mxu1 %vm2339_vm0, %v2340_v1  ;;  %v1717_v16 = vpack.c.bf16 %v1048_v15, %v1047_v14 }
 0x28a   : > { %1686 = vmatprep.subr.bf16.mxu1 %v2338_v0 }
 0x28d   : > { %1688 = vmatpush3.bf16.msra.mxu1 %v1687_v20  ;;  %v1051_v20 = vld [vmem:[#allocation5 + $0x30] sm:$0xff] }
 0x28e   : > { %1623 = vmatprep.subr.mxu1 %v2340_v1  ;;  %v1723_v22 = vpack.c.bf16 %v1052_v21, %v1051_v20 }
 0x290   : > { %1586 = vmatmul.mubr.msk.f32.vlgmr.msra.gmra.mrb[2].mxu1 %vm615_vm1, %v2833_v12 }
 0x291   : > { %1625 = vmatprep.mubr.msk.f32.mxu1 %vm2339_vm0, %v2340_v1  ;;  %1624 = vmatpush3.msk.msra.mxu1 %vm862_vm4, %v966_v62 }
 0x292   : > { %1713 = vmatprep.subr.bf16.mxu1 %v2338_v0 }
 0x35b   : > { %v770_v31 = vpop.f32.mrb[0].mxu1 }
 0x35c   : > { %v771_v32 = vadd.f32 %v1488_v30, %v770_v31  ;;  %v1576_v33 = vpop.f32.mrb[1].mxu1  ;;  %v1732_v30 = vpack.c.bf16 %v1058_v29, %v1057_v28  ;;  %v1059_v31 = vld [vmem:[#allocation5 + $0x70] sm:$0xff] }
 0x35e   : > { %v775_v34 = vsel %vm774_vm3, %v771_v32, -inf }
 0x35f   : > { %776 = vmax.xlane.f32.xlu1 %v775_v34  ;;  %v1131_v34 = vld [vmem:[#allocation17] sm:$0xff] }
 0x363   : > { %v858_v35 = vpop.f32.mrb[2].mxu1 }
 0x364   : > { %v1587_v36 = vpop.f32.mrb[3].mxu1  ;;  %v863_v37 = vsel %vm862_vm4, %v858_v35, -inf }
 0x365   : > { %864 = vmax.xlane.f32.xlu0 %v863_v37  ;;  %v1133_v36 = vld [vmem:[#allocation17 + $0x10] sm:$0xff] }
 0x366   : > { %v1741_v39 = vpack.c.bf16 %v1134_v38, %v1133_v36 }
 0x3ec   : > { %v777_v53 = vpop.xlane.xlu1 %776 }
 0x3ed   : > { %v778_v54 = vsub.f32 %v771_v32, %v777_v53  ;;  %v1060_v32 = vld [vmem:[#allocation5 + $0x78] sm:$0xff] }
 0x3ee   : > { %v1735_v33 = vpack.c.bf16 %v1060_v32, %v1059_v31 }
 0x3ef   : > { %v779_v55 = vmul.f32 1.442695, %v778_v54 }
 0x3f1   : > { %1880 = vpow2.f32 %v779_v55 }
 0x3f2   : > { %v865_v56 = vpop.xlane.xlu0 %864 }
 0x3f3   : > { %v866_v57 = vsub.f32 %v858_v35, %v865_v56  ;;  %v1132_v35 = vld [vmem:[#allocation17 + $0x8] sm:$0xff] }
 0x3f4   : > { %v1738_v37 = vpack.c.bf16 %v1132_v35, %v1131_v34 }
 0x3f5   : > { %v867_v58 = vmul.f32 1.442695, %v866_v57 }
 0x3f7   : > { %1882 = vpow2.f32 %v867_v58 }
 0x3fb   : > { %v1881_v59 = vpop.eup %1880 }
 0x3fc   : > { %v781_v60 = vsel %vm774_vm3, %v1881_v59, 0.0 }
 0x3fd   : > { %782 = vadd.xlane.f32.xlu1 %v781_v60 }
 0x401   : > { %v2855_v61 = vpop.eup %1882 }
 0x402   : > { %1621 = vmatmul.mubr.f32.vlgmr.msra.gmra.mrb[2].mxu0 %v2855_v61 }
 0x403   : > { %1671 = vmatprep.mubr.msk.f32.mxu0 %vm2339_vm0, %v2340_v1  ;;  %1739 = vmatpush3.bf16.msra.mxu0 %v1738_v37 }
 0x404   : > { %1740 = vmatprep.subr.bf16.mxu0 %v2338_v0 }
 0x407   : > { %1742 = vmatpush3.bf16.msra.mxu0 %v1741_v39 }
 0x40e   : > { %1135 = vrot.lane.b32.xlu1 %v2833_v12, %s2342_s29  ;;  %v1714_v12 = vpack.c.bf16 %v1046_v8, %v1045_v7 }
 0x48a   : > { %v783_v63 = vpop.xlane.xlu1 %782 }
 0x48b   : > { %1884 = vrcp.f32 %v783_v63 }
 0x495   : > { %v1885_v5 = vpop.eup %1884 }
 0x496   : > { %v785_v6 = vmul.f32 %v1885_v5, %v1881_v59 }
 0x4d5   : > { %v951_v2 = vpop.f32.mrb[2].mxu0 }
 0x4d6   : > { %v955_v3 = vmax.f32 %v951_v2, 1e-30  ;;  %v1622_v4 = vpop.f32.mrb[3].mxu0 }
 0x4d8   : > { %1886 = vrcp.f32 %v955_v3 }
 0x4e2   : > { %v1887_v9 = vpop.eup %1886 }
 0x4e3   : > { %v957_v11 = vmul.f32 %v1887_v9, %v785_v6 }
 0x4e5   : > { %v965_v13 = vmul.f32 %v1491_v10, %v957_v11 }
 0x4e7   : > { %1626 = vmatmul.mubr.msk.f32.vlgmr.msra.gmra.mrb[4].mxu1 %vm967_vm5, %v965_v13 }
 0x4e8   : > { %1715 = vmatpush3.bf16.msra.mxu1 %v1714_v12  ;;  %1660 = vmatprep.mubr.msk.f32.mxu1 %vm2339_vm0, %v2340_v1  ;;  %v1055_v1 = vld [vmem:[#allocation5 + $0x50] sm:$0xff] }
 0x4e9   : > { %1716 = vmatprep.subr.bf16.mxu1 %v2338_v0  ;;  %v1729_v27 = vpack.c.bf16 %v1056_v26, %v1055_v1 }
 0x4ec   : > { %1718 = vmatpush3.bf16.msra.mxu1 %v1717_v16 }
 0x4ed   : > { %1719 = vmatprep.subr.bf16.mxu1 %v2338_v0 }
 0x4f0   : > { %1721 = vmatpush3.bf16.msra.mxu1 %v1720_v19 }
 0x4f1   : > { %1722 = vmatprep.subr.bf16.mxu1 %v2338_v0 }
 0x4f4   : > { %1724 = vmatpush3.bf16.msra.mxu1 %v1723_v22 }
 0x4f5   : > { %1725 = vmatprep.subr.bf16.mxu1 %v2338_v0 }
 0x4f8   : > { %1727 = vmatpush3.bf16.msra.mxu1 %v1726_v25 }
 0x4f9   : > { %1728 = vmatprep.subr.bf16.mxu1 %v2338_v0 }
 0x4fc   : > { %1730 = vmatpush3.bf16.msra.mxu1 %v1729_v27 }
 0x4fd   : > { %1731 = vmatprep.subr.bf16.mxu1 %v2338_v0 }
 0x500   : > { %1733 = vmatpush3.bf16.msra.mxu1 %v1732_v30 }
 0x501   : > { %1734 = vmatprep.subr.bf16.mxu1 %v2338_v0 }
 0x504   : > { %1736 = vmatpush3.bf16.msra.mxu1 %v1735_v33 }
 0x5ba   : > { %v1040_v40 = vpop.f32.mrb[4].mxu1 }
 0x5bb   : > { %v1044_v41 = vmul.f32 %v2855_v61, %v1040_v40  ;;  %v1627_v42 = vpop.f32.mrb[5].mxu1 }
 0x5bd   : > { %1214 = vst [vmem:[%s609_s16] sm:$0xf] %v1044_v41  ;;  %1661 = vmatmul.mubr.f32.vlgmr.msra.gmra.mrb[6].mxu1 %v1044_v41 }
 0x690   : > { %v1127_v43 = vpop.f32.mrb[6].mxu1 }
 0x691   : > { %v1662_v44 = vpop.f32.mrb[7].mxu1  ;;  %1672 = vmatmul.mubr.msk.f32.vlgmr.msra.gmra.mrb[4].mxu0 %vm615_vm1, %v1127_v43 }
 0x692   : > { %2199 = shalt.err (!%p2196_p10)
}
 0x693   : > { %s2200_s10 = scalar_lea.hbm %s2880_s18, 64  ;;  %s2204_s16 = scalar_lea.hbm %s3034_s28, 128 }
 0x694   : > { %p2201_p3 = scmp.ne.s32.totalorder %s2880_s18, %s2200_s10  ;;  %p2205_p4 = scmp.lt.u32.totalorder %s2880_s18, %s3034_s28 }
 0x695   : > { %p2206_p9 = scmp.lt.u32.totalorder %s2204_s16, %s2200_s10  ;;  %p2208_p11 = scmp.lt.u32.totalorder %s2200_s10, %s2880_s18 }
 0x696   : > { %p2202_p7 = pnand %p2201_p3, %p2731_p2 }
 0x697   : > { %p2207_p8 = por %p2206_p9, %p2205_p4 }
 0x698   : > { %p2203_p12 = pneg %p2202_p7 }
 0x699   : > { %p2209_p1 = por %p2208_p11, %p2207_p8 }
 0x69b   : > { %p2210_p13 = pnand %p2209_p1, %p2203_p12 }
 0x69d   : > { %2213 = shalt.err (!%p2210_p13)
}
 0x69e   : > { %1768 = dma.vmem_to_hbm [thread:$0]  (%p2731_p2), %s1250_s12, 64, %s2880_s18, %s1221_s30   ;;  %v1136_v0 = vpop.permute.xlu1 %1135  ;;  %vm1212_vm6 = vcmask 257024  }
 0x69f   : > { %s602_s20 = scalar_lea.vmem [#allocation19], %s2787_s22  ;;  %s3035_s11 = sld [smem:[#allocation39_spill]] }
 0x6a0   : > { %s1235_s2 = sshll.u32 %s602_s20, 4  ;;  %s1216_s12 = scalar_lea.sflag [#allocation4], %s2784_s14  ;;  %s2907_s2 = int_to_ptr.vmem [resolvable:$true] %s1235_s2 }
 0x6a1   : > { %s2214_s18 = scalar_lea.vmem %s2907_s2, 64  ;;  %s2344_s22 = smov [#allocation19]  }
 0x6a2   : > { %p2215_p5 = scmp.ne.s32.totalorder %s2907_s2, %s2214_s18  ;;  %s2218_s30 = sshll.u32 %s2344_s22, 4  ;;  %s2219_s30 = int_to_ptr.vmem [resolvable:$false] %s2218_s30 }
 0x6a3   : > { %s2220_s25 = scalar_lea.vmem %s2219_s30, 128  ;;  %p2221_p10 = scmp.lt.s32.totalorder %s2907_s2, %s2219_s30 }
 0x6a4   : > { %p2216_p6 = pnand %p2215_p5, %p2731_p2  ;;  %p2222_p3 = scmp.lt.s32.totalorder %s2220_s25, %s2214_s18 }
 0x6a5   : > { %s2905_s10 = scalar_lea.hbm %s3035_s11, %s2592_s26 }
 0x6a6   : > { %p2217_p0 = pneg %p2216_p6  ;;  %p2223_p7 = por %p2222_p3, %p2221_p10 }
 0x6a8   : > { %p2224_p12 = pnand %p2223_p7, %p2217_p0 }
 0x764   : > { %v1207_v45 = vpop.f32.mrb[4].mxu0 }
 0x765   : > { %v1208_v46 = vadd.f32 %v1207_v45, %v1136_v0  ;;  %v1673_v47 = vpop.f32.mrb[5].mxu0 }
 0x767   : > { %1888 = vtanh.f32 %v1208_v46 }
 0x771   : > { %v1889_v48 = vpop.eup %1888 }
 0x772   : > { %1213 = vst.msk [vmem:[%s602_s20] sm:$0xf] %vm1212_vm6, %v1889_v48 }
 0x773   : > { %2227 = shalt.err (!%p2224_p12)
}
 0x774   : > { %s2228_s26 = scalar_lea.hbm %s2905_s10, 64  ;;  %s2232_s16 = scalar_lea.hbm %s3035_s11, 128 }
 0x775   : > { %p2229_p4 = scmp.ne.s32.totalorder %s2905_s10, %s2228_s26  ;;  %p2233_p11 = scmp.lt.u32.totalorder %s2905_s10, %s3035_s11 }
 0x776   : > { %p2234_p1 = scmp.lt.u32.totalorder %s2232_s16, %s2228_s26  ;;  %p2236_p5 = scmp.lt.u32.totalorder %s2228_s26, %s2905_s10 }
 0x777   : > { %p2230_p9 = pnand %p2229_p4, %p2731_p2 }
 0x778   : > { %p2235_p13 = por %p2234_p1, %p2233_p11 }
 0x779   : > { %p2231_p8 = pneg %p2230_p9 }
 0x77a   : > { %p2237_p6 = por %p2236_p5, %p2235_p13 }
 0x77c   : > { %p2238_p0 = pnand %p2237_p6, %p2231_p8 }
 0x77e   : > { %2241 = shalt.err (!%p2238_p0)
}
 0x77f   : > { %1767 = dma.vmem_to_hbm [thread:$0]  (%p2731_p2), %s2907_s2, 64, %s2905_s10, %s1216_s12  }
 0x780 PF: > { %s3036_s20 = sld [smem:[#allocation31_spill]]  ;;  %s3037_s1 = sld [smem:[#allocation35_spill]] }
 0x781   : > { %s3038_s0 = sld [smem:[#allocation33_spill]] }
 0x786   : > { %s1261_s18 = sand.u32 1, %s3036_s20   ;;  %p3039_p10 = scmp.ne.s32.totalorder %s3037_s1, 0 }
 0x787   : > { %p3040_p3 = scmp.ge.s32.totalorder %s3038_s0, 2  ;;  %s1262_s22 = scalar_lea.sflag [#allocation4], %s1261_s18 }
 0x789   : > { %p1804_p7 = pnand %p3040_p3, %p3039_p10 }
 0x78b   : > { %2295 = dma.done.wait (!%p1804_p7), %s1262_s22, 64  }
 0x78c   : > { %2297 = vsyncadd (!%p1804_p7), %s1262_s22, 4294967232  ;;  %s1271_s30 = scalar_lea.sflag [#allocation21], %s1261_s18 }
 0x78d   : > { %2299 = dma.done.wait (!%p1804_p7), %s1271_s30, 64  }
 0x78e   : > { %2301 = vsyncadd (!%p1804_p7), %s1271_s30, 4294967232  ;;  %s36_s22 = sadd.s32 1, %s3038_s0   ;;  %s3041_s17 = sld [smem:[#allocation32_spill]] }
 0x78f   : > { %p33_p12 = scmp.ge.s32.totalorder %s36_s22, 4   ;;  %s3042_s18 = smov %s2312_s19 }
 0x790   : > { %s3043_s19 = smov %s2740_s23  ;;  %s3044_s20 = smov %s2320_s21 }
 0x791   : > { %s3045_s21 = smov %s3047_s15  ;;  %35 = sbr.rel (!%p33_p12) target bundleno = 19 (0x13), region = 165 }
 0x798   :  { %1276 = vsyncpa [#allocation3], 1 }
 0x799   :  { %1278 = vsyncpa [#allocation3 + $0x1], 1 }
 0x79a   :  { %1279 = vsyncpa [#allocation6], 1 }
 0x79b   :  { %1280 = vsyncpa [#allocation9], 1 }
 0x79c   :  { %1281 = vsyncpa [#allocation12], 1 }
 0x79d   :  { %1282 = vsyncpa [#allocation15], 1 }
 0x79e   :  { %1283 = vsyncpa [#allocation18], 1 }
 0x79f   :  { %1284 = vsyncpa [#allocation4], 1 }
 0x7a0   :  { %1286 = vsyncpa [#allocation4 + $0x1], 1 }
 0x7a1   :  { %1287 = vsyncpa [#allocation21], 1 }
 0x7a2   :  { %1289 = vsyncpa [#allocation21 + $0x1], 1 }

// kernel: tpu_custom_call.1
= control target key start
LH: loop header
LB: loop body
LE: loop exit
PB: predicated region body
PF: predicated region fallthrough
CT: control target
= control target key end

     0   :  { %s3251_s0 = inlined_call_operand.hbm [shape: f32[2,4,32], index: 0, kind: input, shape index: {}]   ;;  %s3252_s1 = inlined_call_operand.hbm [shape: f32[2,128,32], index: 1, kind: input, shape index: {}]   ;;  %s3253_s2 = inlined_call_operand.hbm [shape: f32[2,32,128], index: 2, kind: input, shape index: {}]   ;;  %s3254_s3 = inlined_call_operand.hbm [shape: f32[2,16,4], index: 3, kind: input, shape index: {}]   ;;  %s3255_s4 = inlined_call_operand.hbm [shape: f32[2,4,128], index: 4, kind: input, shape index: {}]   ;;  %s3256_s5 = inlined_call_operand.hbm [shape: f32[2,128,4], index: 5, kind: input, shape index: {}]   ;;  %s3257_s6 = inlined_call_operand.hbm [shape: f32[2,1,4], index: 6, kind: input, shape index: {}]   ;;  %s3258_s7 = inlined_call_operand.hbm [shape: f32[2,1,4], index: 7, kind: input, shape index: {}]   ;;  %s3259_s8 = inlined_call_operand.hbm [shape: f32[32,80], index: 8, kind: input, shape index: {}]   ;;  %s3260_s9 = inlined_call_operand.hbm [shape: f32[32,32], index: 9, kind: input, shape index: {}]   ;;  %s3261_s10 = inlined_call_operand.hbm [shape: f32[2,4,32], index: 10, kind: output, shape index: {0}]   ;;  %s3262_s11 = inlined_call_operand.hbm [shape: f32[2,4,128], index: 11, kind: output, shape index: {1}]  }
   0x1   :  { %3297 = sst [smem:[#allocation40_spill]] %s3252_s1 }
   0x2   :  { %3298 = sst [smem:[#allocation41_spill]] %s3254_s3 }
   0x3   :  { %3299 = sst [smem:[#allocation42_spill]] %s3259_s8 }
   0x4   :  { %3300 = sst [smem:[#allocation43_spill]] %s3261_s10 }
   0x5   :  { %3301 = sst [smem:[#allocation44_spill]] %s3262_s11 }
   0x6   :  { %17 = vsyncpa [#allocation3], 0 }
   0x7   :  { %19 = vsyncpa [#allocation3 + $0x1], 0 }
   0x8   :  { %20 = vsyncpa [#allocation6], 0 }
   0x9   :  { %22 = vsyncpa [#allocation6 + $0x1], 0 }
   0xa   :  { %23 = vsyncpa [#allocation9], 0 }
   0xb   :  { %25 = vsyncpa [#allocation9 + $0x1], 0 }
   0xc   :  { %26 = vsyncpa [#allocation12], 0 }
   0xd   :  { %28 = vsyncpa [#allocation12 + $0x1], 0 }
   0xe   :  { %29 = vsyncpa [#allocation15], 0 }
   0xf   :  { %31 = vsyncpa [#allocation15 + $0x1], 0 }
  0x10   :  { %32 = vsyncpa [#allocation18], 0 }
  0x11   :  { %33 = vsyncpa [#allocation4], 0 }
  0x12   :  { %35 = vsyncpa [#allocation4 + $0x1], 0 }
  0x13   :  { %36 = vsyncpa [#allocation21], 0 }
  0x14   :  { %38 = vsyncpa [#allocation21 + $0x1], 0  ;;  %s2580_s17 = smov 0   ;;  %s2582_s18 = smov 0  }
  0x15   :  { %s2584_s19 = smov 0   ;;  %s2586_s20 = smov 0  }
  0x16   :  { %s2588_s21 = smov 0   ;;  %s2590_s22 = smov 0  }
  0x17 LB: > { %3302 = sst [smem:[#allocation31_spill]] %s2479_s17  ;;  %s2611_s23 = sadd.s32 4294967295, %s2499_s22   ;;  %s2499_s22 = sphi %s2590_s22, %s44_s22   ;;  %s2495_s21 = sphi %s2588_s21, %s3363_s21   ;;  %s2491_s20 = sphi %s2586_s20, %s3362_s20   ;;  %s2487_s19 = sphi %s2584_s19, %s3358_s19   ;;  %s2483_s18 = sphi %s2582_s18, %s3361_s18   ;;  %s2479_s17 = sphi %s2580_s17, %s3360_s17  }
  0x18   : > { %3303 = sst [smem:[#allocation32_spill]] %s2487_s19  ;;  %s1635_s24 = sadd.s32 4294967294, %s2499_s22  }
  0x19   : > { %3304 = sst [smem:[#allocation33_spill]] %s2491_s20  ;;  %p72_p0 = scmp.ne.s32.totalorder %s2487_s19, %s2483_s18 }
  0x1a   : > { %3305 = sst [smem:[#allocation34_spill]] %s2499_s22  ;;  %p73_p1 = scmp.eq.s32.totalorder %s2499_s22, 0 }
  0x1b   : > { %3306 = sst [smem:[#allocation35_spill]] %s2611_s23  ;;  %p78_p2 = scmp.ne.s32.totalorder %s2483_s18, %s2479_s17 }
  0x1c   : > { %p3267_p3 = scmp.eq.s32.totalorder %s2611_s23, 0  ;;  %p328_p4 = scmp.eq.s32.totalorder %s2611_s23, 1 }
  0x1d   : > { %p2622_p5 = por %p73_p1, %p72_p0  ;;  %p334_p6 = scmp.eq.s32.totalorder %s1635_s24, 1 }
  0x1e   : > { %p2628_p7 = por %p3267_p3, %p78_p2  ;;  %p2632_p8 = por %p328_p4, %p72_p0 }
  0x1f   : > { %p2636_p9 = por %p334_p6, %p78_p2  ;;  %p1636_p10 = scmp.ge.s32.totalorder %s2499_s22, 1 }
  0x20   : > { %s3308_s27 = scalar_select %p2628_p7, 1, 0 }
  0x21   : > { %s3309_s28 = scalar_select %p2632_p8, 1, 0 }
  0x22   : > { %s3311_s29 = scalar_select %p2636_p9, 1, 0 }
  0x23   : > { %3310 = sst [smem:[#allocation36_spill]] %s3309_s28  ;;  %p369_p11 = scmp.lt.s32.totalorder %s2499_s22, 3 }
  0x24   : > { %3312 = sst [smem:[#allocation37_spill]] %s3311_s29  ;;  %s2501_s12 = smov [#allocation16]  }
  0x25   : > { %p2642_p12 = pnand %p1636_p10, %p369_p11  ;;  %s381_s13 = sshll.u32 %s2501_s12, 4  ;;  %s2646_s13 = int_to_ptr.vmem [resolvable:$true] %s381_s13 }
  0x26   : > { %p1994_p1 = scmp.lt.s32.totalorder %s2499_s22, 2  ;;  %s56_s16 = sadd.s32 1, %s2495_s21 }
  0x27   : > { %s3313_s30 = scalar_select %p2642_p12, 1, 0 }
  0x28   : > { %p1953_p13 = pneg %p2642_p12  ;;  %p2660_p4 = pnand %p1994_p1, %p2622_p5 }
  0x29   : > { %p2665_p6 = scmp.ge.s32.totalorder %s56_s16, 2  ;;  %s3317_s8 = sld [smem:[#allocation42_spill]] }
  0x2a   : > { %p2654_p2 = pnand %p1953_p13, %p3267_p3 }
  0x2b   : > { %s3315_s15 = scalar_select %p2660_p4, 1, 0 }
  0x2c   : > { %s3314_s14 = scalar_select %p2654_p2, 1, 0 }
  0x2d   : > { %p3282_p11 = pneg %p2654_p2 }
  0x2f   : > { %s2065_s29 = scalar_lea.hbm %s3317_s8, 512 }
  0x30   : > { %p2066_p10 = scmp.ne.s32.totalorder %s3317_s8, %s2065_s29  ;;  %p2072_p1 = scmp.lt.u32.totalorder %s2065_s29, %s3317_s8 }
  0x32   : > { %p2068_p5 = pnand %p3282_p11, %p2066_p10 }
  0x34   : > { %p2069_p13 = pneg %p2068_p5 }
  0x36   : > { %p2074_p0 = pnand %p2072_p1, %p2069_p13 }
  0x38   : > { %2077 = shalt.err (!%p2074_p0)
}
  0x39   : > { %s2078_s25 = scalar_lea.vmem %s2646_s13, 512  ;;  %p2086_p7 = scmp.lt.s32.totalorder %s2646_s13, %s2646_s13 }
  0x3a   : > { %p2079_p3 = scmp.ne.s32.totalorder %s2646_s13, %s2078_s25  ;;  %p2087_p10 = scmp.lt.s32.totalorder %s2078_s25, %s2078_s25 }
  0x3c   : > { %p2081_p9 = pnand %p2079_p3, %p3282_p11  ;;  %p2088_p5 = por %p2087_p10, %p2086_p7 }
  0x3e   : > { %p2082_p8 = pneg %p2081_p9 }
  0x40   : > { %p2089_p12 = pnand %p2088_p5, %p2082_p8 }
  0x42   : > { %2092 = shalt.err (!%p2089_p12)
}
  0x43   : > { %s3276_s10 = smov 128   ;;  %s3278_s11 = smov 8  }
  0x44   : > { %1956 = dma.hbm_to_vmem [thread:$0]  (!%p2654_p2), %s3317_s8, 512, %s2646_s13, [#allocation15], %s3276_s10, %s3276_s10, %s3278_s11  }
  0x45   : > { %s2700_s12 = sand.u32 1, %s2487_s19   ;;  %s3365_s16 = smov (%p2665_p6, %s56_s16), 0 }
  0x46   : > { %3318 = sst [smem:[#allocation38_spill]] %s3365_s16  ;;  %s2707_s26 = sand.u32 1, %s2499_s22  }
  0x47   : > { %s3280_s25 = sshll.u32 %s2700_s12, 7  ;;  %s60_s28 = ssub.s32 %s2495_s21, %s3365_s16 }
  0x48   : > { %p63_p3 = scmp.eq.s32.totalorder %s60_s28, 0  ;;  %s3281_s20 = sshll.u32 %s2495_s21, 11 }
  0x49   : > { %s431_s23 = scalar_lea.vmem [#allocation5], %s3280_s25  ;;  %s3319_s13 = sadd.s32 1, %s2487_s19 }
  0x4a   : > { %s438_s17 = sshll.u32 %s431_s23, 4  ;;  %s3321_s1 = sld [smem:[#allocation40_spill]]  ;;  %s2727_s17 = int_to_ptr.vmem [resolvable:$true] %s438_s17 }
  0x4b   : > { %s2718_s29 = scalar_select %p63_p3, %s2487_s19, %s3319_s13  }
  0x4c   : > { %p2734_p8 = pneg %p2660_p4 }
  0x4d   : > { %3320 = sst [smem:[#allocation39_spill]] %s2718_s29 }
  0x4e   : > { %s3322_s23 = scalar_select %p2734_p8, 1, 0 }
  0x50   : > { %s2725_s11 = scalar_lea.hbm %s3321_s1, %s3281_s20  ;;  %s2098_s24 = scalar_lea.hbm %s3321_s1, 4096 }
  0x51   : > { %s2093_s8 = scalar_lea.hbm %s2725_s11, 2048  ;;  %p2099_p0 = scmp.lt.u32.totalorder %s2725_s11, %s3321_s1 }
  0x52   : > { %p2094_p7 = scmp.ne.s32.totalorder %s2725_s11, %s2093_s8  ;;  %p2100_p6 = scmp.lt.u32.totalorder %s2098_s24, %s2093_s8 }
  0x53   : > { %p2102_p1 = scmp.lt.u32.totalorder %s2093_s8, %s2725_s11 }
  0x54   : > { %p2096_p9 = pnand %p2734_p8, %p2094_p7  ;;  %p2101_p13 = por %p2100_p6, %p2099_p0 }
  0x56   : > { %p2097_p12 = pneg %p2096_p9  ;;  %p2103_p10 = por %p2102_p1, %p2101_p13 }
  0x58   : > { %p2104_p5 = pnand %p2103_p10, %p2097_p12 }
  0x5a   : > { %2107 = shalt.err (!%p2104_p5)
}
  0x5b   : > { %s2108_s28 = scalar_lea.vmem %s2727_s17, 2048  ;;  %s2504_s10 = smov [#allocation5]  }
  0x5c   : > { %p2109_p3 = scmp.ne.s32.totalorder %s2727_s17, %s2108_s28  ;;  %s2113_s13 = sshll.u32 %s2504_s10, 4  ;;  %s2114_s13 = int_to_ptr.vmem [resolvable:$false] %s2113_s13 }
  0x5d   : > { %s2115_s20 = scalar_lea.vmem %s2114_s13, 4096  ;;  %p2116_p11 = scmp.lt.s32.totalorder %s2727_s17, %s2114_s13 }
  0x5e   : > { %p2111_p7 = pnand %p2109_p3, %p2734_p8  ;;  %p2117_p2 = scmp.lt.s32.totalorder %s2115_s20, %s2108_s28 }
  0x60   : > { %p2112_p9 = pneg %p2111_p7  ;;  %p2118_p0 = por %p2117_p2, %p2116_p11 }
  0x62   : > { %p2119_p6 = pnand %p2118_p0, %p2112_p9 }
  0x64   : > { %2122 = shalt.err (!%p2119_p6)
}
  0x65   : > { %s3323_s8 = smov 8   ;;  %s3324_s25 = smov 128  }
  0x66   : > { %s3325_s24 = scalar_lea.sflag [#allocation6], %s2707_s26  ;;  %s1648_s10 = sshll.u32 %s2700_s12, 4 }
  0x67   : > { %1966 = dma.hbm_to_vmem [thread:$0]  (!%p2660_p4), %s2725_s11, 2048, %s2727_s17, %s3325_s24, %s3324_s25, %s3324_s25, %s3323_s8  }
  0x68   : > { %s1685_s13 = sshll.u32 %s2495_s21, 8  ;;  %s3326_s3 = sld [smem:[#allocation41_spill]] }
  0x69   : > { %s473_s16 = scalar_lea.vmem [#allocation8], %s1648_s10  ;;  %s3289_s19 = scalar_lea.sflag [#allocation9], %s2707_s26 }
  0x6a   : > { %s480_s29 = sshll.u32 %s473_s16, 4  ;;  %s2769_s29 = int_to_ptr.vmem [resolvable:$true] %s480_s29 }
  0x6e   : > { %s2767_s1 = scalar_lea.hbm %s3326_s3, %s1685_s13  ;;  %s2128_s24 = scalar_lea.hbm %s3326_s3, 512 }
  0x6f   : > { %s2123_s22 = scalar_lea.hbm %s2767_s1, 256  ;;  %p2129_p13 = scmp.lt.u32.totalorder %s2767_s1, %s3326_s3 }
  0x70   : > { %p2124_p2 = scmp.ne.s32.totalorder %s2767_s1, %s2123_s22  ;;  %p2130_p1 = scmp.lt.u32.totalorder %s2128_s24, %s2123_s22 }
  0x71   : > { %p2132_p5 = scmp.lt.u32.totalorder %s2123_s22, %s2767_s1 }
  0x72   : > { %p2126_p11 = pnand %p2124_p2, %p2734_p8  ;;  %p2131_p10 = por %p2130_p1, %p2129_p13 }
  0x74   : > { %p2127_p12 = pneg %p2126_p11  ;;  %p2133_p3 = por %p2132_p5, %p2131_p10 }
  0x76   : > { %p2134_p7 = pnand %p2133_p3, %p2127_p12 }
  0x78   : > { %2137 = shalt.err (!%p2134_p7)
}
  0x79   : > { %s2138_s16 = scalar_lea.vmem %s2769_s29, 256  ;;  %s2505_s10 = smov [#allocation8]  }
  0x7a   : > { %p2139_p9 = scmp.ne.s32.totalorder %s2769_s29, %s2138_s16  ;;  %s2143_s20 = sshll.u32 %s2505_s10, 4  ;;  %s2144_s20 = int_to_ptr.vmem [resolvable:$false] %s2143_s20 }
  0x7b   : > { %s2145_s11 = scalar_lea.vmem %s2144_s20, 512  ;;  %p2146_p2 = scmp.lt.s32.totalorder %s2769_s29, %s2144_s20 }
  0x7c   : > { %p2141_p0 = pnand %p2139_p9, %p2734_p8  ;;  %p2147_p11 = scmp.lt.s32.totalorder %s2145_s11, %s2138_s16 }
  0x7e   : > { %p2142_p6 = pneg %p2141_p0  ;;  %p2148_p13 = por %p2147_p11, %p2146_p2 }
  0x80   : > { %p2149_p1 = pnand %p2148_p13, %p2142_p6 }
  0x82   : > { %2152 = shalt.err (!%p2149_p1)
}
  0x83   : > { %1972 = dma.hbm_to_vmem [thread:$0]  (!%p2660_p4), %s2767_s1, 256, %s2769_s29, %s3289_s19, %s3324_s25, %s3324_s25, %s3323_s8  }
  0x84   : > { %s3327_s22 = sshll.u32 %s2495_s21, 11  ;;  %s3328_s28 = sshll.u32 %s2700_s12, 7 }
  0x85   : > { %s2803_s13 = scalar_lea.hbm %s3256_s5, %s3327_s22  ;;  %s512_s16 = scalar_lea.vmem [#allocation11], %s3328_s28 }
  0x86   : > { %s519_s10 = sshll.u32 %s512_s16, 4  ;;  %s2506_s20 = smov [#allocation17]   ;;  %s2807_s10 = int_to_ptr.vmem [resolvable:$true] %s519_s10 }
  0x87   : > { %s2809_s11 = sshll.u32 %s2506_s20, 4  ;;  %s3294_s3 = scalar_lea.sflag [#allocation12], %s2707_s26  ;;  %s395_s11 = int_to_ptr.vmem [resolvable:$true] %s2809_s11 }
  0x88   : > { %s2153_s1 = scalar_lea.hbm %s2803_s13, 2048  ;;  %s2158_s17 = scalar_lea.hbm %s3256_s5, 4096 }
  0x89   : > { %p2154_p12 = scmp.ne.s32.totalorder %s2803_s13, %s2153_s1  ;;  %p2159_p3 = scmp.lt.u32.totalorder %s2803_s13, %s3256_s5 }
  0x8a   : > { %p2160_p7 = scmp.lt.u32.totalorder %s2158_s17, %s2153_s1  ;;  %p2162_p0 = scmp.lt.u32.totalorder %s2153_s1, %s2803_s13 }
  0x8b   : > { %p2156_p10 = pnand %p2154_p12, %p2734_p8 }
  0x8c   : > { %p2161_p9 = por %p2160_p7, %p2159_p3 }
  0x8d   : > { %p2157_p5 = pneg %p2156_p10 }
  0x8e   : > { %p2163_p6 = por %p2162_p0, %p2161_p9 }
  0x90   : > { %p2164_p2 = pnand %p2163_p6, %p2157_p5 }
  0x92   : > { %2167 = shalt.err (!%p2164_p2)
}
  0x93   : > { %s2168_s28 = scalar_lea.vmem %s2807_s10, 2048  ;;  %s2507_s16 = smov [#allocation11]  }
  0x94   : > { %p2169_p11 = scmp.ne.s32.totalorder %s2807_s10, %s2168_s28  ;;  %s2173_s20 = sshll.u32 %s2507_s16, 4  ;;  %s2174_s20 = int_to_ptr.vmem [resolvable:$false] %s2173_s20 }
  0x95   : > { %s2175_s19 = scalar_lea.vmem %s2174_s20, 4096  ;;  %p2176_p12 = scmp.lt.s32.totalorder %s2807_s10, %s2174_s20 }
  0x96   : > { %p2171_p13 = pnand %p2169_p11, %p2734_p8  ;;  %p2177_p10 = scmp.lt.s32.totalorder %s2175_s19, %s2168_s28 }
  0x98   : > { %p2172_p1 = pneg %p2171_p13  ;;  %p2178_p3 = por %p2177_p10, %p2176_p12 }
  0x9a   : > { %p2179_p7 = pnand %p2178_p3, %p2172_p1 }
  0x9c   : > { %2182 = shalt.err (!%p2179_p7)
}
  0x9d   : > { %1978 = dma.hbm_to_vmem [thread:$0]  (!%p2660_p4), %s2803_s13, 2048, %s2807_s10, %s3294_s3, %s3324_s25, %s3324_s25, %s3323_s8  }
  0x9e   : > { %s2183_s22 = scalar_lea.hbm %s3260_s9, 512  ;;  %p3329_p9 = scmp.ne.s32.totalorder %s3314_s14, 0 }
  0x9f   : > { %p2184_p5 = scmp.ne.s32.totalorder %s3260_s9, %s2183_s22  ;;  %p2190_p11 = scmp.lt.u32.totalorder %s2183_s22, %s3260_s9 }
  0xa0   : > { %p3330_p0 = pneg %p3329_p9 }
  0xa2   : > { %p2186_p6 = pnand %p2184_p5, %p3330_p0 }
  0xa4   : > { %p2187_p2 = pneg %p2186_p6 }
  0xa6   : > { %p2192_p13 = pnand %p2190_p11, %p2187_p2 }
  0xa8   : > { %2195 = shalt.err (!%p2192_p13)
}
  0xa9   : > { %s2196_s13 = scalar_lea.vmem %s395_s11, 512  ;;  %p3331_p12 = pmov %p3330_p0 }
  0xaa   : > { %p2197_p1 = scmp.ne.s32.totalorder %s395_s11, %s2196_s13  ;;  %p2204_p7 = scmp.lt.s32.totalorder %s395_s11, %s395_s11 }
  0xab   : > { %p2205_p4 = scmp.lt.s32.totalorder %s2196_s13, %s2196_s13 }
  0xac   : > { %p2199_p10 = pnand %p2197_p1, %p3331_p12 }
  0xad   : > { %p2206_p8 = por %p2205_p4, %p2204_p7 }
  0xae   : > { %p2200_p3 = pneg %p2199_p10 }
  0xb0   : > { %p2207_p0 = pnand %p2206_p8, %p2200_p3 }
  0xb2   : > { %2210 = shalt.err (!%p2207_p0)
}
  0xb3   : > { %1959 = dma.hbm_to_vmem [thread:$0]  (!%p3329_p9), %s3260_s9, 512, %s395_s11, [#allocation18], %s3324_s25, %s3324_s25, %s3323_s8  }
  0xb4   : > { %s3295_s19 = sshll.u32 %s2700_s12, 2  ;;  %s1641_s1 = sshll.u32 %s2495_s21, 6 }
  0xb5   : > { %s2867_s17 = scalar_lea.hbm %s3251_s0, %s1641_s1  ;;  %s412_s14 = scalar_lea.vmem [#allocation2], %s3295_s19 }
  0xb6   : > { %s420_s24 = sshll.u32 %s412_s14, 4  ;;  %s2876_s11 = scalar_lea.hbm %s3255_s4, %s1641_s1  ;;  %s2871_s24 = int_to_ptr.vmem [resolvable:$true] %s420_s24 }
  0xb7   : > { %s409_s13 = scalar_lea.sflag [#allocation3], %s2700_s12  ;;  %s2211_s10 = scalar_lea.hbm %s2867_s17, 64 }
  0xb8   : > { %p2212_p4 = scmp.ne.s32.totalorder %s2867_s17, %s2211_s10  ;;  %p3332_p8 = scmp.ne.s32.totalorder %s3322_s23, 0 }
  0xb9   : > { %s2216_s22 = scalar_lea.hbm %s3251_s0, 128  ;;  %p2217_p6 = scmp.lt.u32.totalorder %s2867_s17, %s3251_s0 }
  0xba   : > { %p2214_p5 = pnand %p2212_p4, %p3332_p8  ;;  %p2218_p2 = scmp.lt.u32.totalorder %s2216_s22, %s2211_s10 }
  0xbb   : > { %p2220_p13 = scmp.lt.u32.totalorder %s2211_s10, %s2867_s17 }
  0xbc   : > { %p2215_p9 = pneg %p2214_p5  ;;  %p2219_p11 = por %p2218_p2, %p2217_p6 }
  0xbe   : > { %p2221_p1 = por %p2220_p13, %p2219_p11 }
  0xc0   : > { %p2222_p12 = pnand %p2221_p1, %p2215_p9 }
  0xc2   : > { %2225 = shalt.err (!%p2222_p12)
}
  0xc3   : > { %s2226_s1 = scalar_lea.vmem %s2871_s24, 64  ;;  %s2508_s14 = smov [#allocation2]  }
  0xc4   : > { %p2227_p10 = scmp.ne.s32.totalorder %s2871_s24, %s2226_s1  ;;  %s2231_s28 = sshll.u32 %s2508_s14, 4  ;;  %s2232_s28 = int_to_ptr.vmem [resolvable:$false] %s2231_s28 }
  0xc5   : > { %s2233_s3 = scalar_lea.vmem %s2232_s28, 128  ;;  %p2234_p0 = scmp.lt.s32.totalorder %s2871_s24, %s2232_s28 }
  0xc6   : > { %p2229_p3 = pnand %p2227_p10, %p3332_p8  ;;  %p2235_p4 = scmp.lt.s32.totalorder %s2233_s3, %s2226_s1 }
  0xc8   : > { %p2230_p7 = pneg %p2229_p3  ;;  %p2236_p5 = por %p2235_p4, %p2234_p0 }
  0xca   : > { %p2237_p6 = pnand %p2236_p5, %p2230_p7 }
  0xcc   : > { %2240 = shalt.err (!%p2237_p6)
}
  0xcd   : > { %p3333_p9 = scmp.ne.s32.totalorder %s3315_s15, 0  ;;  %s1645_s19 = sshll.u32 %s2700_s12, 5 }
  0xce   : > { %s1684_s16 = sshll.u32 %s2495_s21, 9  ;;  %s452_s22 = scalar_lea.vmem [#allocation7], %s1645_s19 }
  0xcf   : > { %1963 = dma.hbm_to_vmem [thread:$0]  (!%p3333_p9), %s2867_s17, 64, %s2871_s24, %s409_s13  }
  0xd0   : > { %s2905_s29 = scalar_lea.hbm %s3253_s2, %s1684_s16  ;;  %s459_s1 = sshll.u32 %s452_s22, 4  ;;  %s2909_s1 = int_to_ptr.vmem [resolvable:$true] %s459_s1 }
  0xd1   : > { %s3334_s14 = sshll.u32 %s2700_s12, 2  ;;  %s2241_s17 = scalar_lea.hbm %s2905_s29, 512 }
  0xd2   : > { %s494_s28 = scalar_lea.vmem [#allocation10], %s3334_s14  ;;  %p2242_p2 = scmp.ne.s32.totalorder %s2905_s29, %s2241_s17 }
  0xd3   : > { %s501_s3 = sshll.u32 %s494_s28, 4  ;;  %s2246_s16 = scalar_lea.hbm %s3253_s2, 1024  ;;  %s2911_s3 = int_to_ptr.vmem [resolvable:$true] %s501_s3 }
  0xd4   : > { %p2244_p11 = pnand %p2242_p2, %p3332_p8  ;;  %p2247_p1 = scmp.lt.u32.totalorder %s2905_s29, %s3253_s2 }
  0xd5   : > { %p2248_p12 = scmp.lt.u32.totalorder %s2246_s16, %s2241_s17  ;;  %p2250_p3 = scmp.lt.u32.totalorder %s2241_s17, %s2905_s29 }
  0xd6   : > { %p2245_p13 = pneg %p2244_p11 }
  0xd7   : > { %p2249_p10 = por %p2248_p12, %p2247_p1 }
  0xd9   : > { %p2251_p7 = por %p2250_p3, %p2249_p10 }
  0xdb   : > { %p2252_p0 = pnand %p2251_p7, %p2245_p13 }
  0xdd   : > { %2255 = shalt.err (!%p2252_p0)
}
  0xde   : > { %s2256_s19 = scalar_lea.vmem %s2909_s1, 512  ;;  %s2509_s22 = smov [#allocation7]  }
  0xdf   : > { %p2257_p4 = scmp.ne.s32.totalorder %s2909_s1, %s2256_s19  ;;  %s2261_s14 = sshll.u32 %s2509_s22, 4  ;;  %s2262_s14 = int_to_ptr.vmem [resolvable:$false] %s2261_s14 }
  0xe0   : > { %s2263_s28 = scalar_lea.vmem %s2262_s14, 1024  ;;  %p2264_p2 = scmp.lt.s32.totalorder %s2909_s1, %s2262_s14 }
  0xe1   : > { %p2259_p5 = pnand %p2257_p4, %p3332_p8  ;;  %p2265_p11 = scmp.lt.s32.totalorder %s2263_s28, %s2256_s19 }
  0xe3   : > { %p2260_p6 = pneg %p2259_p5  ;;  %p2266_p1 = por %p2265_p11, %p2264_p2 }
  0xe5   : > { %p2267_p12 = pnand %p2266_p1, %p2260_p6 }
  0xe7   : > { %2270 = shalt.err (!%p2267_p12)
}
  0xe8   : > { %s3335_s17 = scalar_lea.sflag [#allocation6], %s2707_s26  ;;  %s2271_s24 = scalar_lea.hbm %s2876_s11, 64 }
  0xe9   : > { %1969 = dma.hbm_to_vmem [thread:$0]  (!%p3333_p9), %s2905_s29, 512, %s2909_s1, %s3335_s17, %s3324_s25, %s3324_s25, %s3323_s8  }
  0xea   : > { %p2272_p13 = scmp.ne.s32.totalorder %s2876_s11, %s2271_s24  ;;  %s2276_s10 = scalar_lea.hbm %s3255_s4, 128 }
  0xeb   : > { %p2277_p7 = scmp.lt.u32.totalorder %s2876_s11, %s3255_s4  ;;  %p2278_p0 = scmp.lt.u32.totalorder %s2276_s10, %s2271_s24 }
  0xec   : > { %p2274_p10 = pnand %p2272_p13, %p3332_p8  ;;  %p2280_p5 = scmp.lt.u32.totalorder %s2271_s24, %s2876_s11 }
  0xed   : > { %p2279_p4 = por %p2278_p0, %p2277_p7 }
  0xee   : > { %p2275_p3 = pneg %p2274_p10 }
  0xef   : > { %p2281_p6 = por %p2280_p5, %p2279_p4 }
  0xf1   : > { %p2282_p2 = pnand %p2281_p6, %p2275_p3 }
  0xf3   : > { %2285 = shalt.err (!%p2282_p2)
}
  0xf4   : > { %s2286_s8 = scalar_lea.vmem %s2911_s3, 64  ;;  %s2510_s25 = smov [#allocation10]  }
  0xf5   : > { %p2287_p11 = scmp.ne.s32.totalorder %s2911_s3, %s2286_s8  ;;  %s2291_s29 = sshll.u32 %s2510_s25, 4  ;;  %s2292_s29 = int_to_ptr.vmem [resolvable:$false] %s2291_s29 }
  0xf6   : > { %s2293_s1 = scalar_lea.vmem %s2292_s29, 128  ;;  %p2294_p13 = scmp.lt.s32.totalorder %s2911_s3, %s2292_s29 }
  0xf7   : > { %p2289_p1 = pnand %p2287_p11, %p3332_p8  ;;  %p2295_p10 = scmp.lt.s32.totalorder %s2293_s1, %s2286_s8 }
  0xf9   : > { %p2290_p12 = pneg %p2289_p1  ;;  %p2296_p7 = por %p2295_p10, %p2294_p13 }
  0xfb   : > { %p2297_p0 = pnand %p2296_p7, %p2290_p12 }
  0xfd   : > { %2300 = shalt.err (!%p2297_p0)
}
  0xfe   : > { %s3336_s22 = scalar_lea.sflag [#allocation9], %s2707_s26  ;;  %s1656_s14 = sshll.u32 %s2495_s21, 4 }
  0xff   : > { %1975 = dma.hbm_to_vmem [thread:$0]  (!%p3333_p9), %s2876_s11, 64, %s2911_s3, %s3336_s22  }
 0x100   : > { %s2968_s24 = scalar_lea.hbm %s3257_s6, %s1656_s14  ;;  %s532_s13 = scalar_lea.vmem [#allocation13], %s2700_s12 }
 0x101   : > { %s539_s16 = sshll.u32 %s532_s13, 4  ;;  %s2301_s10 = scalar_lea.hbm %s2968_s24, 16  ;;  %s540_s16 = int_to_ptr.vmem [resolvable:$true] %s539_s16 }
 0x102   : > { %p2302_p3 = scmp.ne.s32.totalorder %s2968_s24, %s2301_s10  ;;  %s2306_s20 = scalar_lea.hbm %s3257_s6, 32 }
 0x103   : > { %p2307_p6 = scmp.lt.u32.totalorder %s2968_s24, %s3257_s6  ;;  %p2308_p2 = scmp.lt.u32.totalorder %s2306_s20, %s2301_s10 }
 0x104   : > { %p2304_p4 = pnand %p2302_p3, %p3332_p8  ;;  %p2310_p1 = scmp.lt.u32.totalorder %s2301_s10, %s2968_s24 }
 0x105   : > { %p2309_p11 = por %p2308_p2, %p2307_p6 }
 0x106   : > { %p2305_p5 = pneg %p2304_p4 }
 0x107   : > { %p2311_p12 = por %p2310_p1, %p2309_p11 }
 0x109   : > { %p2312_p13 = pnand %p2311_p12, %p2305_p5 }
 0x10b   : > { %2315 = shalt.err (!%p2312_p13)
}
 0x10c   : > { %s2316_s25 = scalar_lea.vmem %s540_s16, 16  ;;  %s2511_s29 = smov [#allocation13]  }
 0x10d   : > { %p2317_p10 = scmp.ne.s32.totalorder %s540_s16, %s2316_s25  ;;  %s2321_s1 = sshll.u32 %s2511_s29, 4  ;;  %s2322_s1 = int_to_ptr.vmem [resolvable:$false] %s2321_s1 }
 0x10e   : > { %s2323_s22 = scalar_lea.vmem %s2322_s1, 32  ;;  %p2324_p3 = scmp.lt.s32.totalorder %s540_s16, %s2322_s1 }
 0x10f   : > { %p2319_p7 = pnand %p2317_p10, %p3332_p8  ;;  %p2325_p4 = scmp.lt.s32.totalorder %s2323_s22, %s2316_s25 }
 0x111   : > { %p2320_p0 = pneg %p2319_p7  ;;  %p2326_p9 = por %p2325_p4, %p2324_p3 }
 0x113   : > { %p2327_p2 = pnand %p2326_p9, %p2320_p0 }
 0x115   : > { %2330 = shalt.err (!%p2327_p2)
}
 0x116   : > { %p3337_p6 = scmp.ne.s32.totalorder %s3315_s15, 0  ;;  %s3338_s28 = scalar_lea.sflag [#allocation12], %s2707_s26 }
 0x117   : > { %s2995_s10 = scalar_lea.hbm %s3258_s7, %s1656_s14  ;;  %s549_s11 = scalar_lea.vmem [#allocation14], %s2700_s12 }
 0x118   : > { %1981 = dma.hbm_to_vmem [thread:$0]  (!%p3337_p6), %s2968_s24, 16, %s540_s16, %s3338_s28  }
 0x119   : > { %s556_s3 = sshll.u32 %s549_s11, 4  ;;  %s547_s20 = scalar_lea.sflag [#allocation15], %s2707_s26  ;;  %s557_s3 = int_to_ptr.vmem [resolvable:$true] %s556_s3 }
 0x11a   : > { %s2331_s19 = scalar_lea.hbm %s2995_s10, 16  ;;  %s2336_s8 = scalar_lea.hbm %s3258_s7, 32 }
 0x11b   : > { %p2332_p9 = scmp.ne.s32.totalorder %s2995_s10, %s2331_s19  ;;  %p2337_p1 = scmp.lt.u32.totalorder %s2995_s10, %s3258_s7 }
 0x11c   : > { %p2338_p12 = scmp.lt.u32.totalorder %s2336_s8, %s2331_s19  ;;  %p2340_p10 = scmp.lt.u32.totalorder %s2331_s19, %s2995_s10 }
 0x11d   : > { %p2334_p5 = pnand %p2332_p9, %p3332_p8 }
 0x11e   : > { %p2339_p13 = por %p2338_p12, %p2337_p1 }
 0x11f   : > { %p2335_p11 = pneg %p2334_p5 }
 0x120   : > { %p2341_p7 = por %p2340_p10, %p2339_p13 }
 0x122   : > { %p2342_p0 = pnand %p2341_p7, %p2335_p11 }
 0x124   : > { %2345 = shalt.err (!%p2342_p0)
}
 0x125   : > { %s2346_s12 = scalar_lea.vmem %s557_s3, 16  ;;  %s2512_s26 = smov [#allocation14]  }
 0x126   : > { %p2347_p3 = scmp.ne.s32.totalorder %s557_s3, %s2346_s12  ;;  %s2351_s29 = sshll.u32 %s2512_s26, 4  ;;  %s2352_s29 = int_to_ptr.vmem [resolvable:$false] %s2351_s29 }
 0x127   : > { %s2353_s1 = scalar_lea.vmem %s2352_s29, 32  ;;  %p2354_p9 = scmp.lt.s32.totalorder %s557_s3, %s2352_s29 }
 0x128   : > { %p2349_p4 = pnand %p2347_p3, %p3332_p8  ;;  %p2355_p5 = scmp.lt.s32.totalorder %s2353_s1, %s2346_s12 }
 0x12a   : > { %p2350_p2 = pneg %p2349_p4  ;;  %p2356_p6 = por %p2355_p5, %p2354_p9 }
 0x12c   : > { %p2357_p1 = pnand %p2356_p6, %p2350_p2 }
 0x12e   : > { %2360 = shalt.err (!%p2357_p1)
}
 0x12f   : > { %p3339_p12 = scmp.ne.s32.totalorder %s3315_s15, 0  ;;  %p3340_p11 = scmp.ne.s32.totalorder %s3313_s30, 0 }
 0x130   : > { %s3019_s23 = sand.u32 (!%p3340_p11), 1, %s2483_s18   ;;  %p3341_p8 = scmp.ne.s32.totalorder (!%p3340_p11), %s3308_s27, 0 }
 0x131   : > { %1984 = dma.hbm_to_vmem [thread:$0]  (!%p3339_p12), %s2995_s10, 16, %s557_s3, %s547_s20  }
 0x132   : > { %565 = sbr.rel (%p3340_p11) target bundleno = 1948 (0x79c), region = 60  ;;  %s3022_s22 = sshll.u32 (!%p3340_p11), %s3019_s23, 2 }
 0x133   : > { %s568_s28 = scalar_lea.sflag (!%p3340_p11), [#allocation3], %s3019_s23  ;;  %s571_s17 = scalar_lea.vmem (!%p3340_p11), [#allocation2], %s3022_s22 }
 0x139   : > { %2442 = dma.done.wait (%p3341_p8), %s568_s28, 64  }
 0x13a   : > { %2444 = vsyncadd (%p3341_p8), %s568_s28, 4294967232  ;;  %s3342_s15 = sld [smem:[#allocation35_spill]]  ;;  %s1660_s13 = sshll.u32 %s3019_s23, 7 }
 0x13b   : > { %s3032_s11 = scalar_lea.vmem [#allocation5], %s1660_s13 }
 0x140   : > { %s576_s30 = sand.u32 1, %s3342_s15  }
 0x141   : > { %s577_s10 = scalar_lea.sflag [#allocation6], %s576_s30 }
 0x142   : > { %2446 = dma.done.wait (%p3341_p8), %s577_s10, 2560  }
 0x143   : > { %2448 = vsyncadd (%p3341_p8), %s577_s10, 4294964736  ;;  %s1661_s3 = sshll.u32 %s3019_s23, 5  ;;  %s1662_s20 = sshll.u32 %s3019_s23, 4 }
 0x144   : > { %s3040_s19 = scalar_lea.vmem [#allocation7], %s1661_s3  ;;  %s595_s24 = scalar_lea.sflag [#allocation9], %s576_s30 }
 0x145   : > { %s3042_s16 = scalar_lea.vmem [#allocation8], %s1662_s20 }
 0x146   : > { %2450 = dma.done.wait (%p3341_p8), %s595_s24, 320  }
 0x147   : > { %2452 = vsyncadd (%p3341_p8), %s595_s24, 4294966976  ;;  %s607_s8 = scalar_lea.vmem [#allocation10], %s3022_s22  ;;  %s613_s25 = scalar_lea.sflag [#allocation12], %s576_s30 }
 0x148   : > { %s3049_s14 = scalar_lea.vmem [#allocation11], %s1660_s13 }
 0x149   : > { %2454 = dma.done.wait (%p3341_p8), %s613_s25, 2064  }
 0x14a   : > { %2456 = vsyncadd (%p3341_p8), %s613_s25, 4294965232  ;;  %s624_s12 = scalar_lea.vmem [#allocation13], %s3019_s23  ;;  %s630_s26 = scalar_lea.sflag [#allocation15], %s576_s30 }
 0x14b   : > { %s632_s29 = scalar_lea.vmem [#allocation14], %s3019_s23 }
 0x14c   : > { %2458 = dma.done.wait (%p3341_p8), %s630_s26, 16  }
 0x14d   : > { %2460 = vsyncadd (%p3341_p8), %s630_s26, 4294967280  ;;  %p3343_p6 = scmp.eq.s32.totalorder %s3342_s15, 0 }
 0x14f   : > { %2462 = dma.done.wait (%p3343_p6), [#allocation15], 512   ;;  %p3344_p13 = pmov %p3343_p6 }
 0x150   : > { %p3345_p10 = pmov %p3343_p6 }
 0x151   : > { %2464 = vsyncadd (%p3344_p13), [#allocation15], 4294966784 }
 0x152   : > { %2466 = dma.done.wait (%p3345_p10), [#allocation18], 512   ;;  %p3346_p7 = pmov %p3343_p6 }
 0x153   : > { %v2513_v0 = vmov 0.0|0.0   ;;  %vm2514_vm0 = vmmov 0   ;;  %v2515_v1 = vmov 0.0   ;;  %v718_v2 = vld [vmem:[#allocation16] sm:$0xff]  ;;  %v719_v3 = vld [vmem:[#allocation16 + $0x8] sm:$0xff]  ;;  %v720_v4 = vld [vmem:[#allocation16 + $0x10] sm:$0xff] }
 0x154   : > { %2468 = vsyncadd (%p3346_p7), [#allocation18], 4294966784  ;;  %1856 = vmatprep.subr.bf16.mxu0 %v2513_v0  ;;  %1749 = vmatprep.mubr.msk.f32.mxu0 %vm2514_vm0, %v2515_v1  ;;  %v1857_v5 = vpack.c.bf16 %v719_v3, %v718_v2  ;;  %v721_v6 = vld [vmem:[#allocation16 + $0x18] sm:$0xff]  ;;  %v717_v8 = vld [vmem:[%s571_s17] sm:$0xf]  ;;  %vm722_vm1 = vcmask 261120  }
 0x155   : > { %1862 = vmatprep.subr.bf16.mxu1 %v2513_v0  ;;  %1756 = vmatprep.mubr.msk.f32.mxu1 %vm2514_vm0, %v2515_v1  ;;  %v1860_v7 = vpack.c.bf16 %v721_v6, %v720_v4  ;;  %v796_v9 = vld [vmem:[%s3042_s16] sm:$0xff]  ;;  %v797_v10 = vld [vmem:[%s3042_s16 + $0x8] sm:$0xff]  ;;  %s2516_s27 = smov 64   ;;  %vm808_vm2 = vcmask 130048   ;;  %vm881_vm3 = vcmask 27648   ;;  %vm969_vm4 = vcmask 1043456  }
 0x156   : > { %1858 = vmatpush3.bf16.msra.mxu0 %v1857_v5  ;;  %v1863_v11 = vpack.c.bf16 %v797_v10, %v796_v9  ;;  %v893_v14 = vld [vmem:[%s3040_s19] sm:$0xff]  ;;  %v894_v15 = vld [vmem:[%s3040_s19 + $0x8] sm:$0xff]  ;;  %v895_v17 = vld [vmem:[%s3040_s19 + $0x10] sm:$0xff]  ;;  %s2517_s1 = smov 96   ;;  %vm1074_vm5 = vcmask 31744   ;;  %s3347_s28 = sld [smem:[#allocation33_spill]] }
 0x157   : > { %1859 = vmatprep.subr.bf16.mxu0 %v2513_v0  ;;  %v1866_v16 = vpack.c.bf16 %v894_v15, %v893_v14  ;;  %v896_v18 = vld [vmem:[%s3040_s19 + $0x18] sm:$0xff]  ;;  %v976_v21 = vld [vmem:[%s3049_s14] sm:$0xff]  ;;  %v977_v22 = vld [vmem:[%s3049_s14 + $0x8] sm:$0xff]  ;;  %s3348_s17 = sld [smem:[#allocation36_spill]]  ;;  %s716_s15 = scalar_lea.vmem [#allocation20], %s3022_s22 }
 0x158   : > { %1864 = vmatpush3.bf16.msra.mxu1 %v1863_v11  ;;  %v1869_v20 = vpack.c.bf16 %v896_v18, %v895_v17  ;;  %v978_v23 = vld [vmem:[%s3049_s14 + $0x10] sm:$0xff]  ;;  %v1872_v24 = vpack.c.bf16 %v977_v22, %v976_v21  ;;  %v979_v25 = vld [vmem:[%s3049_s14 + $0x18] sm:$0xff]  ;;  %v980_v27 = vld [vmem:[%s3049_s14 + $0x20] sm:$0xff]  ;;  %s1356_s20 = sshll.u32 %s716_s15, 4  ;;  %s1328_s19 = scalar_lea.sflag [#allocation21], %s3019_s23  ;;  %s1357_s20 = int_to_ptr.vmem [resolvable:$true] %s1356_s20 }
 0x159   : > { %1865 = vmatprep.subr.bf16.mxu1 %v2513_v0  ;;  %v1875_v26 = vpack.c.bf16 %v979_v25, %v978_v23  ;;  %v981_v28 = vld [vmem:[%s3049_s14 + $0x28] sm:$0xff]  ;;  %v1670_v30 = vld [vmem:[%s624_s12] ss:$0 sm:$0xff]  ;;  %v983_v39 = vld [vmem:[%s3049_s14 + $0x38] sm:$0xff]  ;;  %s2361_s24 = scalar_lea.vmem %s1357_s20, 64  ;;  %s2518_s16 = smov [#allocation20]  }
 0x15a   : > { %1861 = vmatpush3.bf16.msra.mxu0 %v1860_v7  ;;  %v1878_v29 = vpack.c.bf16 %v981_v28, %v980_v27  ;;  %v982_v38 = vld [vmem:[%s3049_s14 + $0x30] sm:$0xff]  ;;  %v984_v41 = vld [vmem:[%s3049_s14 + $0x40] sm:$0xff]  ;;  %v985_v42 = vld [vmem:[%s3049_s14 + $0x48] sm:$0xff]  ;;  %p2362_p0 = scmp.ne.s32.totalorder %s1357_s20, %s2361_s24 }
 0x15b   : > { %1871 = vmatprep.subr.bf16.mxu0 %v2513_v0  ;;  %v1881_v40 = vpack.c.bf16 %v983_v39, %v982_v38  ;;  %v1884_v43 = vpack.c.bf16 %v985_v42, %v984_v41  ;;  %v986_v44 = vld [vmem:[%s3049_s14 + $0x50] sm:$0xff]  ;;  %v987_v45 = vld [vmem:[%s3049_s14 + $0x58] sm:$0xff]  ;;  %v988_v47 = vld [vmem:[%s3049_s14 + $0x60] sm:$0xff] }
 0x15c   : > { %v1887_v46 = vpack.c.bf16 %v987_v45, %v986_v44  ;;  %v989_v48 = vld [vmem:[%s3049_s14 + $0x68] sm:$0xff]  ;;  %v990_v50 = vld [vmem:[%s3049_s14 + $0x70] sm:$0xff]  ;;  %v991_v51 = vld [vmem:[%s3049_s14 + $0x78] sm:$0xff]  ;;  %s1679_s30 = sshll.u32 %s3347_s28, 6 }
 0x15d   : > { %1750 = vmatmul.mubr.msk.f32.vlgmr.msra.gmra.mrb[0].mxu0 %vm722_vm1, %v717_v8  ;;  %v1890_v49 = vpack.c.bf16 %v989_v48, %v988_v47  ;;  %v1893_v52 = vpack.c.bf16 %v991_v51, %v990_v50  ;;  %v1073_v62 = vld [vmem:[%s607_s8] sm:$0xf]  ;;  %v1153_v8 = vld [vmem:[%s3032_s11 + $0x8] sm:$0xff]  ;;  %v1673_v10 = vld [vmem:[%s632_s29] ss:$0 sm:$0xff]  ;;  %p3350_p3 = scmp.ne.s32.totalorder %s3348_s17, 0 }
 0x15e   : > { %1802 = vmatprep.mubr.msk.f32.mxu0 %vm2514_vm0, %v2515_v1  ;;  %1873 = vmatpush3.bf16.msra.mxu0 %v1872_v24  ;;  %v1152_v7 = vld [vmem:[%s3032_s11] sm:$0xff]  ;;  %v1154_v14 = vld [vmem:[%s3032_s11 + $0x10] sm:$0xff]  ;;  %v1155_v15 = vld [vmem:[%s3032_s11 + $0x18] sm:$0xff]  ;;  %s2365_s8 = sshll.u32 %s2518_s16, 4  ;;  %s2366_s8 = int_to_ptr.vmem [resolvable:$false] %s2365_s8 }
 0x15f   : > { %1874 = vmatprep.subr.bf16.mxu0 %v2513_v0  ;;  %v1156_v17 = vld [vmem:[%s3032_s11 + $0x20] sm:$0xff]  ;;  %v1157_v18 = vld [vmem:[%s3032_s11 + $0x28] sm:$0xff]  ;;  %v1159_v21 = vld [vmem:[%s3032_s11 + $0x38] sm:$0xff]  ;;  %p2363_p4 = pnand %p2362_p0, %p3350_p3  ;;  %s2367_s25 = scalar_lea.vmem %s2366_s8, 128 }
 0x160   : > { %v1160_v23 = vld [vmem:[%s3032_s11 + $0x40] sm:$0xff]  ;;  %v1162_v25 = vld [vmem:[%s3032_s11 + $0x50] sm:$0xff]  ;;  %p2368_p9 = scmp.lt.s32.totalorder %s1357_s20, %s2366_s8  ;;  %p2369_p5 = scmp.lt.s32.totalorder %s2367_s25, %s2361_s24 }
 0x161   : > { %v1164_v28 = vld [vmem:[%s3032_s11 + $0x60] sm:$0xff]  ;;  %p2364_p2 = pneg %p2363_p4 }
 0x162   : > { %1876 = vmatpush3.bf16.msra.mxu0 %v1875_v26  ;;  %v1163_v26 = vld [vmem:[%s3032_s11 + $0x58] sm:$0xff]  ;;  %v1241_v38 = vld [vmem:[#allocation17 + $0x18] sm:$0xff]  ;;  %p2370_p1 = por %p2369_p5, %p2368_p9 }
 0x163   : > { %1877 = vmatprep.subr.bf16.mxu0 %v2513_v0  ;;  %v1911_v27 = vpack.c.bf16 %v1163_v26, %v1162_v25 }
 0x164   : > { %p2371_p12 = pnand %p2370_p1, %p2364_p2 }
 0x166   : > { %1879 = vmatpush3.bf16.msra.mxu0 %v1878_v29  ;;  %v1165_v29 = vld [vmem:[%s3032_s11 + $0x68] sm:$0xff] }
 0x167   : > { %1880 = vmatprep.subr.bf16.mxu0 %v2513_v0 }
 0x16a   : > { %1882 = vmatpush3.bf16.msra.mxu0 %v1881_v40 }
 0x16b   : > { %1883 = vmatprep.subr.bf16.mxu0 %v2513_v0 }
 0x16e   : > { %1885 = vmatpush3.bf16.msra.mxu0 %v1884_v43 }
 0x16f   : > { %1886 = vmatprep.subr.bf16.mxu0 %v2513_v0 }
 0x172   : > { %1888 = vmatpush3.bf16.msra.mxu0 %v1887_v46 }
 0x173   : > { %1889 = vmatprep.subr.bf16.mxu0 %v2513_v0 }
 0x176   : > { %1891 = vmatpush3.bf16.msra.mxu0 %v1890_v49 }
 0x177   : > { %1892 = vmatprep.subr.bf16.mxu0 %v2513_v0 }
 0x17a   : > { %1894 = vmatpush3.bf16.msra.mxu0 %v1893_v52 }
 0x17b   : > { %1919 = vmatprep.subr.bf16.mxu0 %v2513_v0 }
 0x230   : > { %v3085_v12 = vpop.f32.mrb[0].mxu0 }
 0x231   : > { %806 = vrot.lane.b32.xlu0 %v3085_v12, %s2516_s27  ;;  %v1751_v13 = vpop.f32.mrb[1].mxu0 }
 0x2a3   : > { %v807_v19 = vpop.permute.xlu0 %806 }
 0x2a4   : > { %1757 = vmatmul.mubr.msk.f32.vlgmr.msra.gmra.mrb[0].mxu1 %vm808_vm2, %v807_v19  ;;  %v1902_v19 = vpack.c.bf16 %v1157_v18, %v1156_v17 }
 0x2a5   : > { %1867 = vmatpush3.bf16.msra.mxu1 %v1866_v16  ;;  %1767 = vmatprep.mubr.msk.f32.mxu1 %vm2514_vm0, %v2515_v1  ;;  %v1899_v16 = vpack.c.bf16 %v1155_v15, %v1154_v14 }
 0x2a6   : > { %1868 = vmatprep.subr.bf16.mxu1 %v2513_v0 }
 0x2a9   : > { %1870 = vmatpush3.bf16.msra.mxu1 %v1869_v20  ;;  %v1158_v20 = vld [vmem:[%s3032_s11 + $0x30] sm:$0xff] }
 0x2aa   : > { %1805 = vmatprep.subr.mxu1 %v2515_v1  ;;  %v1905_v22 = vpack.c.bf16 %v1159_v21, %v1158_v20 }
 0x2ac   : > { %1768 = vmatmul.mubr.msk.f32.vlgmr.msra.gmra.mrb[2].mxu1 %vm722_vm1, %v3085_v12 }
 0x2ad   : > { %1807 = vmatprep.mubr.msk.f32.mxu1 %vm2514_vm0, %v2515_v1  ;;  %1806 = vmatpush3.msk.msra.mxu1 %vm969_vm4, %v1073_v62 }
 0x2ae   : > { %1895 = vmatprep.subr.bf16.mxu1 %v2513_v0 }
 0x377   : > { %v877_v31 = vpop.f32.mrb[0].mxu1 }
 0x378   : > { %v878_v32 = vadd.f32 %v1670_v30, %v877_v31  ;;  %v1758_v33 = vpop.f32.mrb[1].mxu1  ;;  %v1914_v30 = vpack.c.bf16 %v1165_v29, %v1164_v28  ;;  %v1166_v31 = vld [vmem:[%s3032_s11 + $0x70] sm:$0xff] }
 0x37a   : > { %v882_v34 = vsel %vm881_vm3, %v878_v32, -inf }
 0x37b   : > { %883 = vmax.xlane.f32.xlu1 %v882_v34  ;;  %v1238_v34 = vld [vmem:[#allocation17] sm:$0xff] }
 0x37f   : > { %v965_v35 = vpop.f32.mrb[2].mxu1 }
 0x380   : > { %v1769_v36 = vpop.f32.mrb[3].mxu1  ;;  %v970_v37 = vsel %vm969_vm4, %v965_v35, -inf }
 0x381   : > { %971 = vmax.xlane.f32.xlu0 %v970_v37  ;;  %v1240_v36 = vld [vmem:[#allocation17 + $0x10] sm:$0xff] }
 0x382   : > { %v1923_v39 = vpack.c.bf16 %v1241_v38, %v1240_v36 }
 0x408   : > { %v884_v53 = vpop.xlane.xlu1 %883 }
 0x409   : > { %v885_v54 = vsub.f32 %v878_v32, %v884_v53  ;;  %v1167_v32 = vld [vmem:[%s3032_s11 + $0x78] sm:$0xff] }
 0x40a   : > { %v1917_v33 = vpack.c.bf16 %v1167_v32, %v1166_v31 }
 0x40b   : > { %v886_v55 = vmul.f32 1.442695, %v885_v54 }
 0x40d   : > { %2055 = vpow2.f32 %v886_v55 }
 0x40e   : > { %v972_v56 = vpop.xlane.xlu0 %971 }
 0x40f   : > { %v973_v57 = vsub.f32 %v965_v35, %v972_v56  ;;  %v1239_v35 = vld [vmem:[#allocation17 + $0x8] sm:$0xff] }
 0x410   : > { %v1920_v37 = vpack.c.bf16 %v1239_v35, %v1238_v34 }
 0x411   : > { %v974_v58 = vmul.f32 1.442695, %v973_v57 }
 0x413   : > { %2057 = vpow2.f32 %v974_v58 }
 0x417   : > { %v2056_v59 = vpop.eup %2055 }
 0x418   : > { %v888_v60 = vsel %vm881_vm3, %v2056_v59, 0.0 }
 0x419   : > { %889 = vadd.xlane.f32.xlu1 %v888_v60 }
 0x41d   : > { %v3129_v61 = vpop.eup %2057 }
 0x41e   : > { %1803 = vmatmul.mubr.f32.vlgmr.msra.gmra.mrb[2].mxu0 %v3129_v61 }
 0x41f   : > { %1853 = vmatprep.mubr.msk.f32.mxu0 %vm2514_vm0, %v2515_v1  ;;  %1921 = vmatpush3.bf16.msra.mxu0 %v1920_v37 }
 0x420   : > { %1922 = vmatprep.subr.bf16.mxu0 %v2513_v0 }
 0x423   : > { %1924 = vmatpush3.bf16.msra.mxu0 %v1923_v39 }
 0x42a   : > { %1242 = vrot.lane.b32.xlu1 %v3085_v12, %s2517_s1  ;;  %v1896_v12 = vpack.c.bf16 %v1153_v8, %v1152_v7 }
 0x4a6   : > { %v890_v63 = vpop.xlane.xlu1 %889 }
 0x4a7   : > { %2059 = vrcp.f32 %v890_v63 }
 0x4b1   : > { %v2060_v5 = vpop.eup %2059 }
 0x4b2   : > { %v892_v6 = vmul.f32 %v2060_v5, %v2056_v59 }
 0x4f1   : > { %v1058_v2 = vpop.f32.mrb[2].mxu0 }
 0x4f2   : > { %v1062_v3 = vmax.f32 %v1058_v2, 1e-30  ;;  %v1804_v4 = vpop.f32.mrb[3].mxu0 }
 0x4f4   : > { %2061 = vrcp.f32 %v1062_v3 }
 0x4fe   : > { %v2062_v9 = vpop.eup %2061 }
 0x4ff   : > { %v1064_v11 = vmul.f32 %v2062_v9, %v892_v6 }
 0x501   : > { %v1072_v13 = vmul.f32 %v1673_v10, %v1064_v11 }
 0x503   : > { %1808 = vmatmul.mubr.msk.f32.vlgmr.msra.gmra.mrb[4].mxu1 %vm1074_vm5, %v1072_v13 }
 0x504   : > { %1897 = vmatpush3.bf16.msra.mxu1 %v1896_v12  ;;  %1842 = vmatprep.mubr.msk.f32.mxu1 %vm2514_vm0, %v2515_v1  ;;  %v1161_v1 = vld [vmem:[%s3032_s11 + $0x48] sm:$0xff]  ;;  %s3349_s11 = sld [smem:[#allocation44_spill]] }
 0x505   : > { %1898 = vmatprep.subr.bf16.mxu1 %v2513_v0  ;;  %v1908_v24 = vpack.c.bf16 %v1161_v1, %v1160_v23 }
 0x508   : > { %1900 = vmatpush3.bf16.msra.mxu1 %v1899_v16 }
 0x509   : > { %1901 = vmatprep.subr.bf16.mxu1 %v2513_v0 }
 0x50a   : > { %s3176_s3 = scalar_lea.hbm %s3349_s11, %s1679_s30 }
 0x50c   : > { %1903 = vmatpush3.bf16.msra.mxu1 %v1902_v19 }
 0x50d   : > { %1904 = vmatprep.subr.bf16.mxu1 %v2513_v0 }
 0x510   : > { %1906 = vmatpush3.bf16.msra.mxu1 %v1905_v22 }
 0x511   : > { %1907 = vmatprep.subr.bf16.mxu1 %v2513_v0 }
 0x514   : > { %1909 = vmatpush3.bf16.msra.mxu1 %v1908_v24 }
 0x515   : > { %1910 = vmatprep.subr.bf16.mxu1 %v2513_v0 }
 0x518   : > { %1912 = vmatpush3.bf16.msra.mxu1 %v1911_v27 }
 0x519   : > { %1913 = vmatprep.subr.bf16.mxu1 %v2513_v0 }
 0x51c   : > { %1915 = vmatpush3.bf16.msra.mxu1 %v1914_v30 }
 0x51d   : > { %1916 = vmatprep.subr.bf16.mxu1 %v2513_v0 }
 0x520   : > { %1918 = vmatpush3.bf16.msra.mxu1 %v1917_v33 }
 0x5d6   : > { %v1147_v40 = vpop.f32.mrb[4].mxu1 }
 0x5d7   : > { %v1151_v41 = vmul.f32 %v3129_v61, %v1147_v40  ;;  %v1809_v42 = vpop.f32.mrb[5].mxu1 }
 0x5d9   : > { %1321 = vst [vmem:[%s716_s15] sm:$0xf] %v1151_v41  ;;  %1843 = vmatmul.mubr.f32.vlgmr.msra.gmra.mrb[6].mxu1 %v1151_v41 }
 0x6ac   : > { %v1234_v43 = vpop.f32.mrb[6].mxu1 }
 0x6ad   : > { %v1844_v44 = vpop.f32.mrb[7].mxu1  ;;  %1854 = vmatmul.mubr.msk.f32.vlgmr.msra.gmra.mrb[4].mxu0 %vm722_vm1, %v1234_v43 }
 0x6ae   : > { %2374 = shalt.err (!%p2371_p12)
}
 0x6af   : > { %s2375_s14 = scalar_lea.hbm %s3176_s3, 64  ;;  %s2379_s29 = scalar_lea.hbm %s3349_s11, 128 }
 0x6b0   : > { %p2376_p11 = scmp.ne.s32.totalorder %s3176_s3, %s2375_s14  ;;  %p2380_p13 = scmp.lt.u32.totalorder %s3176_s3, %s3349_s11 }
 0x6b1   : > { %p2381_p10 = scmp.lt.u32.totalorder %s2379_s29, %s2375_s14  ;;  %p2383_p0 = scmp.lt.u32.totalorder %s2375_s14, %s3176_s3 }
 0x6b2   : > { %p2377_p8 = pnand %p2376_p11, %p3350_p3 }
 0x6b3   : > { %p2382_p7 = por %p2381_p10, %p2380_p13 }
 0x6b4   : > { %p2378_p6 = pneg %p2377_p8 }
 0x6b5   : > { %p2384_p4 = por %p2383_p0, %p2382_p7 }
 0x6b7   : > { %p2385_p2 = pnand %p2384_p4, %p2378_p6 }
 0x6b9   : > { %2388 = shalt.err (!%p2385_p2)
}
 0x6ba   : > { %1950 = dma.vmem_to_hbm [thread:$0]  (%p3350_p3), %s1357_s20, 64, %s3176_s3, %s1328_s19   ;;  %v1243_v0 = vpop.permute.xlu1 %1242  ;;  %vm1319_vm6 = vcmask 257024  }
 0x6bb   : > { %s709_s15 = scalar_lea.vmem [#allocation19], %s3022_s22  ;;  %s3351_s16 = sld [smem:[#allocation43_spill]] }
 0x6bc   : > { %s1342_s13 = sshll.u32 %s709_s15, 4  ;;  %s1323_s3 = scalar_lea.sflag [#allocation4], %s3019_s23  ;;  %s3204_s13 = int_to_ptr.vmem [resolvable:$true] %s1342_s13 }
 0x6bd   : > { %s2389_s20 = scalar_lea.vmem %s3204_s13, 64  ;;  %s2519_s22 = smov [#allocation19]  }
 0x6be   : > { %p2390_p9 = scmp.ne.s32.totalorder %s3204_s13, %s2389_s20  ;;  %s2393_s28 = sshll.u32 %s2519_s22, 4  ;;  %s2394_s28 = int_to_ptr.vmem [resolvable:$false] %s2393_s28 }
 0x6bf   : > { %s2395_s19 = scalar_lea.vmem %s2394_s28, 128  ;;  %p2396_p12 = scmp.lt.s32.totalorder %s3204_s13, %s2394_s28 }
 0x6c0   : > { %p2391_p5 = pnand %p2390_p9, %p3350_p3  ;;  %p2397_p11 = scmp.lt.s32.totalorder %s2395_s19, %s2389_s20 }
 0x6c1   : > { %s3202_s8 = scalar_lea.hbm %s3351_s16, %s1679_s30 }
 0x6c2   : > { %p2392_p1 = pneg %p2391_p5  ;;  %p2398_p8 = por %p2397_p11, %p2396_p12 }
 0x6c4   : > { %p2399_p6 = pnand %p2398_p8, %p2392_p1 }
 0x780   : > { %v1314_v45 = vpop.f32.mrb[4].mxu0 }
 0x781   : > { %v1315_v46 = vadd.f32 %v1314_v45, %v1243_v0  ;;  %v1855_v47 = vpop.f32.mrb[5].mxu0 }
 0x783   : > { %2063 = vtanh.f32 %v1315_v46 }
 0x78d   : > { %v2064_v48 = vpop.eup %2063 }
 0x78e   : > { %1320 = vst.msk [vmem:[%s709_s15] sm:$0xf] %vm1319_vm6, %v2064_v48 }
 0x78f   : > { %2402 = shalt.err (!%p2399_p6)
}
 0x790   : > { %s2403_s23 = scalar_lea.hbm %s3202_s8, 64  ;;  %s2407_s14 = scalar_lea.hbm %s3351_s16, 128 }
 0x791   : > { %p2404_p13 = scmp.ne.s32.totalorder %s3202_s8, %s2403_s23  ;;  %p2408_p0 = scmp.lt.u32.totalorder %s3202_s8, %s3351_s16 }
 0x792   : > { %p2409_p4 = scmp.lt.u32.totalorder %s2407_s14, %s2403_s23  ;;  %p2411_p9 = scmp.lt.u32.totalorder %s2403_s23, %s3202_s8 }
 0x793   : > { %p2405_p10 = pnand %p2404_p13, %p3350_p3 }
 0x794   : > { %p2410_p2 = por %p2409_p4, %p2408_p0 }
 0x795   : > { %p2406_p7 = pneg %p2405_p10 }
 0x796   : > { %p2412_p5 = por %p2411_p9, %p2410_p2 }
 0x798   : > { %p2413_p1 = pnand %p2412_p5, %p2406_p7 }
 0x79a   : > { %2416 = shalt.err (!%p2413_p1)
}
 0x79b   : > { %1949 = dma.vmem_to_hbm [thread:$0]  (%p3350_p3), %s3204_s13, 64, %s3202_s8, %s1323_s3  }
 0x79c PF: > { %s3352_s29 = sld [smem:[#allocation31_spill]]  ;;  %s3353_s27 = sld [smem:[#allocation37_spill]] }
 0x79d   : > { %s3354_s1 = sld [smem:[#allocation34_spill]] }
 0x7a2   : > { %s1368_s15 = sand.u32 1, %s3352_s29   ;;  %p3355_p12 = scmp.ne.s32.totalorder %s3353_s27, 0 }
 0x7a3   : > { %p3356_p11 = scmp.ge.s32.totalorder %s3354_s1, 2  ;;  %s1369_s10 = scalar_lea.sflag [#allocation4], %s1368_s15 }
 0x7a5   : > { %p1986_p8 = pnand %p3356_p11, %p3355_p12 }
 0x7a7   : > { %2470 = dma.done.wait (!%p1986_p8), %s1369_s10, 64  }
 0x7a8   : > { %2472 = vsyncadd (!%p1986_p8), %s1369_s10, 4294967232  ;;  %s1378_s24 = scalar_lea.sflag [#allocation21], %s1368_s15 }
 0x7a9   : > { %2474 = dma.done.wait (!%p1986_p8), %s1378_s24, 64  }
 0x7aa   : > { %2476 = vsyncadd (!%p1986_p8), %s1378_s24, 4294967232  ;;  %s44_s22 = sadd.s32 1, %s3354_s1   ;;  %s3357_s20 = sld [smem:[#allocation32_spill]] }
 0x7ab   : > { %p41_p6 = scmp.ge.s32.totalorder %s44_s22, 4   ;;  %s3358_s19 = sld [smem:[#allocation39_spill]] }
 0x7ac   : > { %s3359_s13 = sld [smem:[#allocation38_spill]]  ;;  %s3360_s17 = smov %s2483_s18 }
 0x7ad   :  { %43 = sbr.rel (!%p41_p6) target bundleno = 23 (0x17), region = 215 }
 0x7b0   : > { %s3361_s18 = smov %s3357_s20  ;;  %s3362_s20 = smov %s2495_s21 }
 0x7b2   : > { %s3363_s21 = smov %s3359_s13 }
 0x7b4   :  { %1383 = vsyncpa [#allocation3], 1 }
 0x7b5   :  { %1385 = vsyncpa [#allocation3 + $0x1], 1 }
 0x7b6   :  { %1386 = vsyncpa [#allocation6], 1 }
 0x7b7   :  { %1388 = vsyncpa [#allocation6 + $0x1], 1 }
 0x7b8   :  { %1389 = vsyncpa [#allocation9], 1 }
 0x7b9   :  { %1391 = vsyncpa [#allocation9 + $0x1], 1 }
 0x7ba   :  { %1392 = vsyncpa [#allocation12], 1 }
 0x7bb   :  { %1394 = vsyncpa [#allocation12 + $0x1], 1 }
 0x7bc   :  { %1395 = vsyncpa [#allocation15], 1 }
 0x7bd   :  { %1397 = vsyncpa [#allocation15 + $0x1], 1 }
 0x7be   :  { %1398 = vsyncpa [#allocation18], 1 }
 0x7bf   :  { %1399 = vsyncpa [#allocation4], 1 }
 0x7c0   :  { %1401 = vsyncpa [#allocation4 + $0x1], 1 }
 0x7c1   :  { %1402 = vsyncpa [#allocation21], 1 }
 0x7c2   :  { %1404 = vsyncpa [#allocation21 + $0x1], 1 }

</bundles_post_ra>
